<compile_context>
chip_gen: v7x
topology: tpu7x:2x2x1
jax: 0.10.0
libtpu: 0.0.40
codegen_flags: <defaults>
</compile_context>

<pallas_src>
import math

import jax
import jax.numpy as jnp
from jax import lax
from jax.experimental import pallas as pl
from jax.experimental.pallas import tpu as pltpu

# ---- static shapes implied by the PyTorch module ---------------------------------------
SEQ_LEN = 132                                   # forced by nn.LayerNorm([132, cin])
TOKENS = SEQ_LEN + 1                            # + cls token
C_UNIT = 64
STREAM_CIN = (2, 4, 4, 4, 4)                    # ball / A / B / net / court input widths
STREAM_COUT = (3 * C_UNIT, C_UNIT, C_UNIT, C_UNIT, C_UNIT)
CIN_SUM = sum(STREAM_CIN)                       # 18
D_MODEL = sum(STREAM_COUT)                      # 448 -> the only consistent d_model
EPS_EMB = 1e-5                                  # torch LayerNorm default eps (Embeddings)
EPS_ENC = 1e-6                                  # encoder LayerNorms use eps=1e-6
_GELU_K = 0.7978845608028654                    # sqrt(2 / pi)


# ---- small shared helpers (usable both inside kernels and in the JAX reference) --------
def _gelu_tanh(x):
    # TODO(synk): PyTorch F.gelu defaults to the exact erf form; the tanh approximation is
    # used here (identically in kernel and reference) since it lowers to plain VPU/EUP ops.
    return 0.5 * x * (1.0 + jnp.tanh(_GELU_K * (x + 0.044715 * x * x * x)))


def _ln_lastdim(x, g, b, eps):
    mu = jnp.mean(x, axis=-1, keepdims=True)
    d = x - mu
    var = jnp.mean(d * d, axis=-1, keepdims=True)
    return d * lax.rsqrt(var + eps) * g + b


def _largest_block(n, cap=8):
    for bb in range(min(n, cap), 0, -1):
        if n % bb == 0:
            return bb
    return 1


# =========================================================================================
# Embeddings kernel
# =========================================================================================
def _embeddings_kernel(x_ref, mask_ref, seg_ref, g_ref, b_ref, wbd_ref, add_ref, out_ref):
    mask = mask_ref[...]            # (TOKENS, 1)   0 on the cls row, 1 elsewhere
    seg = seg_ref[...]              # (18, 18)      segment-mean matrix (block diagonal)
    g = g_ref[...]                  # (TOKENS, 18)  packed LN gains   (row 0 = 0)
    beta = b_ref[...]               # (TOKENS, 18)  packed LN biases  (row 0 = 0)
    wbd = wbd_ref[...]              # (18, 448)     block-diagonal linear weight
    add = add_ref[...]              # (TOKENS, 448) [cls + pos0 ; bias_cat + pos[1:]]

    for bi in range(x_ref.shape[0]):
        x = x_ref[bi]                                           # (TOKENS, 18), row 0 = 0
        # fused segmented LayerNorm statistics (5 streams at once)
        mu = jnp.dot(jnp.sum(x, axis=0, keepdims=True), seg,
                     preferred_element_type=jnp.float32)        # per-column stream means
        d = (x - mu) * mask
        var = jnp.dot(jnp.sum(d * d, axis=0, keepdims=True), seg,
                      preferred_element_type=jnp.float32)       # per-column stream vars
        xa = d * lax.rsqrt(var + EPS_EMB) * g + beta
        # one block-diagonal MXU matmul == 5 Linears + channel concat
        y = jnp.dot(xa, wbd, preferred_element_type=jnp.float32)   # (TOKENS, 448)
        out_ref[bi] = y + add                                   # single aligned store
    # TODO(synk): nn.Dropout(p=0.0) is the identity and is intentionally omitted.


def pack_embeddings(ball, team_a, team_b, net, court, emb_params, cls_token, pos_embedding):
    """Host-side packing for the embeddings kernel (see header comment)."""
    batch = ball.shape[0]
    x_cat = jnp.concatenate([ball, team_a, team_b, net, court], axis=-1)       # (B, L, 18)
    x_packed = jnp.concatenate(
        [jnp.zeros((batch, 1, CIN_SUM), jnp.float32), x_cat], axis=1)          # (B, L+1, 18)

    zrow = jnp.zeros((1, CIN_SUM), jnp.float32)
    ln_g = jnp.concatenate([zrow, jnp.concatenate([p[0] for p in emb_params], axis=-1)], 0)
    ln_b = jnp.concatenate([zrow, jnp.concatenate([p[1] for p in emb_params], axis=-1)], 0)

    w_bd = jnp.zeros((CIN_SUM, D_MODEL), jnp.float32)          # exact zeros off-diagonal
    seg = jnp.zeros((CIN_SUM, CIN_SUM), jnp.float32)
    r = c = 0
    for cin, cout, p in zip(STREAM_CIN, STREAM_COUT, emb_params):
        w_bd = w_bd.at[r:r + cin, c:c + cout].set(p[2])
        seg = seg.at[r:r + cin, r:r + cin].set(1.0 / (SEQ_LEN * cin))
        r += cin
        c += cout

    bias_cat = jnp.concatenate([p[3].reshape(1, -1) for p in emb_params], axis=-1)  # (1,448)
    row0 = cls_token.reshape(1, D_MODEL) + pos_embedding[0, 0:1, :]                 # (1,448)
    rest = pos_embedding[0, 1:, :] + bias_cat                                       # (L,448)
    add_full = jnp.concatenate([row0, rest], axis=0)                                # (L+1,448)

    mask = jnp.concatenate([jnp.zeros((1, 1), jnp.float32),
                            jnp.ones((SEQ_LEN, 1), jnp.float32)], axis=0)           # (L+1,1)
    return x_packed, mask, seg, ln_g, ln_b, w_bd, add_full


def embeddings_forward(x_packed, mask, seg, ln_g, ln_b, w_bd, add_full):
    batch = x_packed.shape[0]
    bb = _largest_block(batch)                       # whole (small) batch in one grid step

    def fixed_spec(a):
        nd = a.ndim
        return pl.BlockSpec(a.shape, lambda i, nd=nd: (0,) * nd)

    in_specs = [pl.BlockSpec((bb, TOKENS, CIN_SUM), lambda i: (i, 0, 0))]
    in_specs += [fixed_spec(p) for p in (mask, seg, ln_g, ln_b, w_bd, add_full)]

    return pl.pallas_call(
        _embeddings_kernel,
        grid=(batch // bb,),
        in_specs=in_specs,
        out_specs=pl.BlockSpec((bb, TOKENS, D_MODEL), lambda i: (i, 0, 0)),
        out_shape=jax.ShapeDtypeStruct((batch, TOKENS, D_MODEL), jnp.float32),
        compiler_params=pltpu.CompilerParams(dimension_semantics=("parallel",)),
    )(x_packed, mask, seg, ln_g, ln_b, w_bd, add_full)


# =========================================================================================
# Encoder kernel: grid = (batch_blocks, num_layers), activations resident in VMEM scratch
# =========================================================================================
def _make_encoder_kernel(nhead, bb):
    dh = D_MODEL // nhead
    scale = 1.0 / math.sqrt(dh)

    def kernel(x_ref, vec_ref, wq_ref, wk_ref, wv_ref, wp_ref,
               w1_ref, b1_ref, w2_ref, en_ref, out_ref, x_scr):
        layer = pl.program_id(1)

        @pl.when(layer == 0)
        def _():
            x_scr[...] = x_ref[...]

        vec = vec_ref[0]                                     # (9, C) packed per-layer vectors
        an_g, an_b = vec[0:1, :], vec[1:2, :]
        bq, bk, bv, bp = vec[2:3, :], vec[3:4, :], vec[4:5, :], vec[5:6, :]
        fn_g, fn_b, b2 = vec[6:7, :], vec[7:8, :], vec[8:9, :]
        wq, wk, wv, wp = wq_ref[0], wk_ref[0], wv_ref[0], wp_ref[0]
        w1, w2 = w1_ref[0], w2_ref[0]
        b1 = b1_ref[0]                                       # (1, F)

        for bi in range(bb):
            xb = x_scr[bi]                                   # (TOKENS, C)
            # --- multi-head self-attention (pre-norm) + residual -------------------------
            xn = _ln_lastdim(xb, an_g, an_b, EPS_ENC)
            q = jnp.dot(xn, wq, preferred_element_type=jnp.float32) + bq
            k = jnp.dot(xn, wk, preferred_element_type=jnp.float32) + bk
            v = jnp.dot(xn, wv, preferred_element_type=jnp.float32) + bv
            att = jnp.zeros_like(xb)
            for h in range(nhead):
                s0 = h * dh
                qh = q[:, s0:s0 + dh]
                kh = k[:, s0:s0 + dh]
                vh = v[:, s0:s0 + dh]
                scores = lax.dot_general(qh, kh, (((1,), (1,)), ((), ())),
                                         preferred_element_type=jnp.float32) * scale
                m = jnp.max(scores, axis=-1, keepdims=True)
                e = jnp.exp(scores - m)
                probs = e / jnp.sum(e, axis=-1, keepdims=True)
                ctx = jnp.dot(probs, vh, preferred_element_type=jnp.float32)
                # fold the output projection per head: concat_h(ctx_h) @ Wp == sum_h ctx_h @ Wp[h]
                att = att + jnp.dot(ctx, wp[s0:s0 + dh, :],
                                    preferred_element_type=jnp.float32)
            xb = xb + att + bp
            # --- feed-forward (pre-norm) + residual ---------------------------------------
            yn = _ln_lastdim(xb, fn_g, fn_b, EPS_ENC)
            hid = _gelu_tanh(jnp.dot(yn, w1, preferred_element_type=jnp.float32) + b1)
            xb = xb + jnp.dot(hid, w2, preferred_element_type=jnp.float32) + b2
            x_scr[bi] = xb

        @pl.when(layer == pl.num_programs(1) - 1)
        def _():
            en = en_ref[...]                                 # (2, C): [gamma; beta]
            out_ref[...] = _ln_lastdim(x_scr[...], en[0:1, :], en[1:2, :], EPS_ENC)

    return kernel


def encoder_forward(x, layers, en_g, en_b, nhead):
    batch = x.shape[0]
    nl = len(layers)
    dim_ff = layers[0]["w1"].shape[1]
    bb = _largest_block(batch)

    def stack(name):
        return jnp.stack([lp[name] for lp in layers], axis=0)

    # pack all (C,)-shaped per-layer vectors into one (NL, 9, C) array
    vec = jnp.stack(
        [jnp.stack([lp["an_g"], lp["an_b"], lp["bq"], lp["bk"], lp["bv"], lp["bp"],
                    lp["fn_g"], lp["fn_b"], lp["b2"]], axis=0) for lp in layers], axis=0)
    wq, wk, wv, wp = stack("wq"), stack("wk"), stack("wv"), stack("wp")   # (NL, C, C)
    w1, w2 = stack("w1"), stack("w2")                                     # (NL,C,F),(NL,F,C)
    b1 = stack("b1").reshape(nl, 1, dim_ff)                               # (NL, 1, F)
    en = jnp.stack([en_g, en_b], axis=0)                                  # (2, C)

    def layer_spec(shape):
        nd = len(shape)
        return pl.BlockSpec((1,) + tuple(shape[1:]),
                            lambda b, l, nd=nd: (l,) + (0,) * (nd - 1))

    in_specs = [
        pl.BlockSpec((bb, TOKENS, D_MODEL), lambda b, l: (b, 0, 0)),
        layer_spec(vec.shape), layer_spec(wq.shape), layer_spec(wk.shape),
        layer_spec(wv.shape), layer_spec(wp.shape), layer_spec(w1.shape),
        layer_spec(b1.shape), layer_spec(w2.shape),
        pl.BlockSpec((2, D_MODEL), lambda b, l: (0, 0)),
    ]

    return pl.pallas_call(
        _make_encoder_kernel(nhead, bb),
        grid=(batch // bb, nl),
        in_specs=in_specs,
        out_specs=pl.BlockSpec((bb, TOKENS, D_MODEL), lambda b, l: (b, 0, 0)),
        out_shape=jax.ShapeDtypeStruct((batch, TOKENS, D_MODEL), jnp.float32),
        scratch_shapes=[pltpu.VMEM((bb, TOKENS, D_MODEL), jnp.float32)],
        compiler_params=pltpu.CompilerParams(
            dimension_semantics=("parallel", "arbitrary"),
            vmem_limit_bytes=48 * 1024 * 1024),
    )(x, vec, wq, wk, wv, wp, w1, b1, w2, en)


def transformer_forward(ball, team_a, team_b, net, court, emb_params, cls_token,
                        pos_embedding, layers, en_g, en_b, nhead):
    packed = pack_embeddings(ball, team_a, team_b, net, court,
                             emb_params, cls_token, pos_embedding)
    x = embeddings_forward(*packed)
    return encoder_forward(x, layers, en_g, en_b, nhead)


# =========================================================================================
# Pure-JAX reference mirroring the PyTorch forward (high-precision matmuls)
# =========================================================================================
def reference_transformer(ball, team_a, team_b, net, court, emb_params, cls_token,
                          pos_embedding, layers, en_g, en_b, nhead):
    hp = lax.Precision.HIGHEST

    def lnlin(x, g, b, w, bias):
        mu = jnp.mean(x, axis=(1, 2), keepdims=True)
        var = jnp.mean(jnp.square(x - mu), axis=(1, 2), keepdims=True)
        xn = (x - mu) / jnp.sqrt(var + EPS_EMB) * g + b
        return jnp.einsum("blc,cd->bld", xn, w, precision=hp) + bias

    outs = [lnlin(d, *p) for d, p in zip((ball, team_a, team_b, net, court), emb_params)]
    x = jnp.concatenate(outs, axis=2)
    cls = jnp.broadcast_to(cls_token, (ball.shape[0], 1, D_MODEL))
    x = jnp.concatenate([cls, x], axis=1) + pos_embedding

    batch, seq, cdim = x.shape
    dh = cdim // nhead
    for lp in layers:
        h = x
        xn = _ln_lastdim(x, lp["an_g"], lp["an_b"], EPS_ENC)
        q = jnp.einsum("btc,cd->btd", xn, lp["wq"], precision=hp) + lp["bq"]
        k = jnp.einsum("btc,cd->btd", xn, lp["wk"], precision=hp) + lp["bk"]
        v = jnp.einsum("btc,cd->btd", xn, lp["wv"], precision=hp) + lp["bv"]
        q = q.reshape(batch, seq, nhead, dh).transpose(0, 2, 1, 3)
        k = k.reshape(batch, seq, nhead, dh).transpose(0, 2, 1, 3)
        v = v.reshape(batch, seq, nhead, dh).transpose(0, 2, 1, 3)
        scores = jnp.einsum("bhtd,bhsd->bhts", q, k, precision=hp) / math.sqrt(dh)
        probs = jax.nn.softmax(scores, axis=-1)
        ctx = jnp.einsum("bhts,bhsd->bhtd", probs, v, precision=hp)
        ctx = ctx.transpose(0, 2, 1, 3).reshape(batch, seq, cdim)
        x = h + jnp.einsum("btc,cd->btd", ctx, lp["wp"], precision=hp) + lp["bp"]
        h = x
        yn = _ln_lastdim(x, lp["fn_g"], lp["fn_b"], EPS_ENC)
        hid = _gelu_tanh(jnp.einsum("btc,cf->btf", yn, lp["w1"], precision=hp) + lp["b1"])
        x = h + jnp.einsum("btf,fc->btc", hid, lp["w2"], precision=hp) + lp["b2"]
    return _ln_lastdim(x, en_g, en_b, EPS_ENC)


# =========================================================================================
if __name__ == "__main__":
    batch = 2
    num_layers = 2          # keep the demo small (module default is 8)
    nhead = 8
    dim_ff = 1024

    key = jax.random.PRNGKey(0)
    kit = iter(jax.random.split(key, 64))

    def rnd(shape, scale):
        return (scale * jax.random.normal(next(kit), shape)).astype(jnp.float32)

    # Inputs: ball (B, L, 2), A/B/net/court (B, L, 4)
    ball = rnd((batch, SEQ_LEN, 2), 1.0)
    team_a = rnd((batch, SEQ_LEN, 4), 1.0)
    team_b = rnd((batch, SEQ_LEN, 4), 1.0)
    net = rnd((batch, SEQ_LEN, 4), 1.0)
    court = rnd((batch, SEQ_LEN, 4), 1.0)

    # Embeddings parameters (Linear weights stored transposed: (cin, cout) == W.T).
    emb_params = []
    for cin, cout in zip(STREAM_CIN, STREAM_COUT):
        emb_params.append((rnd((SEQ_LEN, cin), 0.1) + 1.0,     # LayerNorm weight
                           rnd((SEQ_LEN, cin), 0.1),           # LayerNorm bias
                           rnd((cin, cout), 0.2),              # Linear weight (transposed)
                           rnd((cout,), 0.1)))                 # Linear bias
    # Module initializes these to zero; small random values exercise the add paths.
    cls_token = rnd((1, 1, D_MODEL), 0.1)
    pos_embedding = rnd((1, TOKENS, D_MODEL), 0.1)

    # Encoder parameters (all Linear weights stored as (in, out) == W.T).
    layers = []
    for _ in range(num_layers):
        layers.append(dict(
            an_g=rnd((D_MODEL,), 0.1) + 1.0, an_b=rnd((D_MODEL,), 0.1),
            wq=rnd((D_MODEL, D_MODEL), 0.05), bq=rnd((D_MODEL,), 0.05),
            wk=rnd((D_MODEL, D_MODEL), 0.05), bk=rnd((D_MODEL,), 0.05),
            wv=rnd((D_MODEL, D_MODEL), 0.05), bv=rnd((D_MODEL,), 0.05),
            wp=rnd((D_MODEL, D_MODEL), 0.05), bp=rnd((D_MODEL,), 0.05),
            fn_g=rnd((D_MODEL,), 0.1) + 1.0, fn_b=rnd((D_MODEL,), 0.1),
            w1=rnd((D_MODEL, dim_ff), 0.05), b1=rnd((dim_ff,), 0.05),
            w2=rnd((dim_ff, D_MODEL), 0.05), b2=rnd((D_MODEL,), 0.05)))
    en_g = rnd((D_MODEL,), 0.1) + 1.0
    en_b = rnd((D_MODEL,), 0.1)

    out = transformer_forward(ball, team_a, team_b, net, court, emb_params, cls_token,
                              pos_embedding, layers, en_g, en_b, nhead)
    out = jax.block_until_ready(out)

    ref = reference_transformer(ball, team_a, team_b, net, court, emb_params, cls_token,
                                pos_embedding, layers, en_g, en_b, nhead)
    assert out.shape == (batch, TOKENS, D_MODEL), out.shape
    max_err = float(jnp.max(jnp.abs(out - ref)))
    # Output is LayerNorm'd (unit scale); tolerance covers MXU multi-pass f32 vs XLA
    # HIGHEST-precision rounding differences across the matmul chain.
    assert jnp.allclose(out, ref, atol=1e-2, rtol=1e-2), max_err
    print("KERNEL_OK")
</pallas_src>

<mosaic_0001>
module attributes {stable_mosaic.version = 11 : i64} {
  func.func @_embeddings_kernel(%arg0: i32, %arg1: memref<2x133x18xf32, #tpu.memory_space<vmem>>, %arg2: memref<133x1xf32, #tpu.memory_space<vmem>>, %arg3: memref<18x18xf32, #tpu.memory_space<vmem>>, %arg4: memref<133x18xf32, #tpu.memory_space<vmem>>, %arg5: memref<133x18xf32, #tpu.memory_space<vmem>>, %arg6: memref<18x448xf32, #tpu.memory_space<vmem>>, %arg7: memref<133x448xf32, #tpu.memory_space<vmem>>, %arg8: memref<2x133x448xf32, #tpu.memory_space<vmem>>) attributes {dimension_semantics = [#tpu.dimension_semantics<parallel>], iteration_bounds = array<i64: 1>, scalar_prefetch = 0 : i64, scratch_operands = 0 : i64, tpu.core_type = #tpu.core_type<tc>, window_params = [{transform_indices = @transform_0, window_bounds = array<i64: 2, 133, 18>}, {pipeline_mode = #tpu.pipeline_mode<synchronous>, transform_indices = @transform_1, window_bounds = array<i64: 133, 1>}, {pipeline_mode = #tpu.pipeline_mode<synchronous>, transform_indices = @transform_2, window_bounds = array<i64: 18, 18>}, {pipeline_mode = #tpu.pipeline_mode<synchronous>, transform_indices = @transform_3, window_bounds = array<i64: 133, 18>}, {pipeline_mode = #tpu.pipeline_mode<synchronous>, transform_indices = @transform_4, window_bounds = array<i64: 133, 18>}, {pipeline_mode = #tpu.pipeline_mode<synchronous>, transform_indices = @transform_5, window_bounds = array<i64: 18, 448>}, {pipeline_mode = #tpu.pipeline_mode<synchronous>, transform_indices = @transform_6, window_bounds = array<i64: 133, 448>}, {transform_indices = @transform_7, window_bounds = array<i64: 2, 133, 448>}]} {
    %c0 = arith.constant 0 : index
    %c0_0 = arith.constant 0 : index
    %0 = vector.load %arg2[%c0, %c0_0] : memref<133x1xf32, #tpu.memory_space<vmem>>, vector<133x1xf32>
    %c0_1 = arith.constant 0 : index
    %c0_2 = arith.constant 0 : index
    %1 = vector.load %arg3[%c0_1, %c0_2] : memref<18x18xf32, #tpu.memory_space<vmem>>, vector<18x18xf32>
    %c0_3 = arith.constant 0 : index
    %c0_4 = arith.constant 0 : index
    %2 = vector.load %arg4[%c0_3, %c0_4] : memref<133x18xf32, #tpu.memory_space<vmem>>, vector<133x18xf32>
    %c0_5 = arith.constant 0 : index
    %c0_6 = arith.constant 0 : index
    %3 = vector.load %arg5[%c0_5, %c0_6] : memref<133x18xf32, #tpu.memory_space<vmem>>, vector<133x18xf32>
    %c0_7 = arith.constant 0 : index
    %c0_8 = arith.constant 0 : index
    %4 = vector.load %arg6[%c0_7, %c0_8] : memref<18x448xf32, #tpu.memory_space<vmem>>, vector<18x448xf32>
    %c0_9 = arith.constant 0 : index
    %c0_10 = arith.constant 0 : index
    %5 = vector.load %arg7[%c0_9, %c0_10] : memref<133x448xf32, #tpu.memory_space<vmem>>, vector<133x448xf32>
    %c0_11 = arith.constant 0 : index
    %c0_12 = arith.constant 0 : index
    %c0_13 = arith.constant 0 : index
    %6 = vector.load %arg1[%c0_11, %c0_12, %c0_13] : memref<2x133x18xf32, #tpu.memory_space<vmem>>, vector<1x133x18xf32>
    %7 = vector.shape_cast %6 : vector<1x133x18xf32> to vector<133x18xf32>
    %cst = arith.constant dense<0.000000e+00> : vector<18xf32>
    %8 = vector.multi_reduction <add>, %7, %cst [0] : vector<133x18xf32> to vector<18xf32>
    %9 = vector.shape_cast %8 : vector<18xf32> to vector<1x18xf32>
    %cst_14 = arith.constant dense<0.000000e+00> : vector<1x18xf32>
    %10 = tpu.matmul %9, %1, %cst_14 {dimension_numbers = #tpu.dot_dimension_numbers<[1], [0], [0], [1], [0, 0, 1, 1], [], []>} : vector<1x18xf32>, vector<18x18xf32>, vector<1x18xf32> -> vector<1x18xf32>
    %11 = vector.broadcast %10 : vector<1x18xf32> to vector<133x18xf32>
    %12 = arith.subf %7, %11 : vector<133x18xf32>
    %13 = vector.broadcast %0 : vector<133x1xf32> to vector<133x18xf32>
    %14 = arith.mulf %12, %13 : vector<133x18xf32>
    %15 = arith.mulf %14, %14 : vector<133x18xf32>
    %cst_15 = arith.constant dense<0.000000e+00> : vector<18xf32>
    %16 = vector.multi_reduction <add>, %15, %cst_15 [0] : vector<133x18xf32> to vector<18xf32>
    %17 = vector.shape_cast %16 : vector<18xf32> to vector<1x18xf32>
    %cst_16 = arith.constant dense<0.000000e+00> : vector<1x18xf32>
    %18 = tpu.matmul %17, %1, %cst_16 {dimension_numbers = #tpu.dot_dimension_numbers<[1], [0], [0], [1], [0, 0, 1, 1], [], []>} : vector<1x18xf32>, vector<18x18xf32>, vector<1x18xf32> -> vector<1x18xf32>
    %cst_17 = arith.constant 9.99999974E-6 : f32
    %19 = vector.broadcast %cst_17 : f32 to vector<1x18xf32>
    %20 = arith.addf %18, %19 : vector<1x18xf32>
    %21 = math.rsqrt %20 : vector<1x18xf32>
    %22 = vector.broadcast %21 : vector<1x18xf32> to vector<133x18xf32>
    %23 = arith.mulf %14, %22 : vector<133x18xf32>
    %24 = arith.mulf %23, %2 : vector<133x18xf32>
    %25 = arith.addf %24, %3 : vector<133x18xf32>
    %cst_18 = arith.constant dense<0.000000e+00> : vector<133x448xf32>
    %26 = tpu.matmul %25, %4, %cst_18 {dimension_numbers = #tpu.dot_dimension_numbers<[1], [0], [0], [1], [0, 0, 1, 1], [], []>} : vector<133x18xf32>, vector<18x448xf32>, vector<133x448xf32> -> vector<133x448xf32>
    %27 = arith.addf %26, %5 : vector<133x448xf32>
    %c0_19 = arith.constant 0 : index
    %c0_20 = arith.constant 0 : index
    %c0_21 = arith.constant 0 : index
    %28 = vector.load %arg8[%c0_19, %c0_20, %c0_21] : memref<2x133x448xf32, #tpu.memory_space<vmem>>, vector<1x133x448xf32>
    %29 = vector.shape_cast %28 : vector<1x133x448xf32> to vector<133x448xf32>
    %30 = vector.shape_cast %27 : vector<133x448xf32> to vector<1x133x448xf32>
    tpu.vector_store %arg8[%c0_19, %c0_20, %c0_21], %30 {strides = array<i32>} : memref<2x133x448xf32, #tpu.memory_space<vmem>>, vector<1x133x448xf32>,
    %c1 = arith.constant 1 : index
    %c0_22 = arith.constant 0 : index
    %c0_23 = arith.constant 0 : index
    %31 = vector.load %arg1[%c1, %c0_22, %c0_23] : memref<2x133x18xf32, #tpu.memory_space<vmem>>, vector<1x133x18xf32>
    %32 = vector.shape_cast %31 : vector<1x133x18xf32> to vector<133x18xf32>
    %cst_24 = arith.constant dense<0.000000e+00> : vector<18xf32>
    %33 = vector.multi_reduction <add>, %32, %cst_24 [0] : vector<133x18xf32> to vector<18xf32>
    %34 = vector.shape_cast %33 : vector<18xf32> to vector<1x18xf32>
    %cst_25 = arith.constant dense<0.000000e+00> : vector<1x18xf32>
    %35 = tpu.matmul %34, %1, %cst_25 {dimension_numbers = #tpu.dot_dimension_numbers<[1], [0], [0], [1], [0, 0, 1, 1], [], []>} : vector<1x18xf32>, vector<18x18xf32>, vector<1x18xf32> -> vector<1x18xf32>
    %36 = vector.broadcast %35 : vector<1x18xf32> to vector<133x18xf32>
    %37 = arith.subf %32, %36 : vector<133x18xf32>
    %38 = vector.broadcast %0 : vector<133x1xf32> to vector<133x18xf32>
    %39 = arith.mulf %37, %38 : vector<133x18xf32>
    %40 = arith.mulf %39, %39 : vector<133x18xf32>
    %cst_26 = arith.constant dense<0.000000e+00> : vector<18xf32>
    %41 = vector.multi_reduction <add>, %40, %cst_26 [0] : vector<133x18xf32> to vector<18xf32>
    %42 = vector.shape_cast %41 : vector<18xf32> to vector<1x18xf32>
    %cst_27 = arith.constant dense<0.000000e+00> : vector<1x18xf32>
    %43 = tpu.matmul %42, %1, %cst_27 {dimension_numbers = #tpu.dot_dimension_numbers<[1], [0], [0], [1], [0, 0, 1, 1], [], []>} : vector<1x18xf32>, vector<18x18xf32>, vector<1x18xf32> -> vector<1x18xf32>
    %cst_28 = arith.constant 9.99999974E-6 : f32
    %44 = vector.broadcast %cst_28 : f32 to vector<1x18xf32>
    %45 = arith.addf %43, %44 : vector<1x18xf32>
    %46 = math.rsqrt %45 : vector<1x18xf32>
    %47 = vector.broadcast %46 : vector<1x18xf32> to vector<133x18xf32>
    %48 = arith.mulf %39, %47 : vector<133x18xf32>
    %49 = arith.mulf %48, %2 : vector<133x18xf32>
    %50 = arith.addf %49, %3 : vector<133x18xf32>
    %cst_29 = arith.constant dense<0.000000e+00> : vector<133x448xf32>
    %51 = tpu.matmul %50, %4, %cst_29 {dimension_numbers = #tpu.dot_dimension_numbers<[1], [0], [0], [1], [0, 0, 1, 1], [], []>} : vector<133x18xf32>, vector<18x448xf32>, vector<133x448xf32> -> vector<133x448xf32>
    %52 = arith.addf %51, %5 : vector<133x448xf32>
    %c1_30 = arith.constant 1 : index
    %c0_31 = arith.constant 0 : index
    %c0_32 = arith.constant 0 : index
    %53 = vector.load %arg8[%c1_30, %c0_31, %c0_32] : memref<2x133x448xf32, #tpu.memory_space<vmem>>, vector<1x133x448xf32>
    %54 = vector.shape_cast %53 : vector<1x133x448xf32> to vector<133x448xf32>
    %55 = vector.shape_cast %52 : vector<133x448xf32> to vector<1x133x448xf32>
    tpu.vector_store %arg8[%c1_30, %c0_31, %c0_32], %55 {strides = array<i32>} : memref<2x133x448xf32, #tpu.memory_space<vmem>>, vector<1x133x448xf32>,
    return
  }
  func.func @transform_0(%arg0: i32) -> (i32, i32, i32) {
    %c0_i32 = arith.constant 0 : i32
    %c0_i32_0 = arith.constant 0 : i32
    %c0_i32_1 = arith.constant 0 : i32
    return %arg0, %c0_i32, %c0_i32_0 : i32, i32, i32
  }
  func.func @transform_1(%arg0: i32) -> (i32, i32) {
    %c0_i32 = arith.constant 0 : i32
    %c0_i32_0 = arith.constant 0 : i32
    %c0_i32_1 = arith.constant 0 : i32
    return %c0_i32, %c0_i32_0 : i32, i32
  }
  func.func @transform_2(%arg0: i32) -> (i32, i32) {
    %c0_i32 = arith.constant 0 : i32
    %c0_i32_0 = arith.constant 0 : i32
    %c0_i32_1 = arith.constant 0 : i32
    return %c0_i32, %c0_i32_0 : i32, i32
  }
  func.func @transform_3(%arg0: i32) -> (i32, i32) {
    %c0_i32 = arith.constant 0 : i32
    %c0_i32_0 = arith.constant 0 : i32
    %c0_i32_1 = arith.constant 0 : i32
    return %c0_i32, %c0_i32_0 : i32, i32
  }
  func.func @transform_4(%arg0: i32) -> (i32, i32) {
    %c0_i32 = arith.constant 0 : i32
    %c0_i32_0 = arith.constant 0 : i32
    %c0_i32_1 = arith.constant 0 : i32
    return %c0_i32, %c0_i32_0 : i32, i32
  }
  func.func @transform_5(%arg0: i32) -> (i32, i32) {
    %c0_i32 = arith.constant 0 : i32
    %c0_i32_0 = arith.constant 0 : i32
    %c0_i32_1 = arith.constant 0 : i32
    return %c0_i32, %c0_i32_0 : i32, i32
  }
  func.func @transform_6(%arg0: i32) -> (i32, i32) {
    %c0_i32 = arith.constant 0 : i32
    %c0_i32_0 = arith.constant 0 : i32
    %c0_i32_1 = arith.constant 0 : i32
    return %c0_i32, %c0_i32_0 : i32, i32
  }
  func.func @transform_7(%arg0: i32) -> (i32, i32, i32) {
    %c0_i32 = arith.constant 0 : i32
    %c0_i32_0 = arith.constant 0 : i32
    %c0_i32_1 = arith.constant 0 : i32
    return %arg0, %c0_i32, %c0_i32_0 : i32, i32, i32
  }
}

</mosaic_0001>

<bundles_post_ra>
// kernel: tpu_custom_call.1
= control target key start
LH: loop header
LB: loop body
LE: loop exit
PB: predicated region body
PF: predicated region fallthrough
CT: control target
= control target key end

     0   :  { %v2175_v0 = vmov 0.0|0.0   ;;  %vm2176_vm0 = vmmov 0   ;;  %v4282_v3 = vmov 0.0   ;;  %vm177_vm1 = vcmask 146432   ;;  %s4274_s2 = inlined_call_operand.vmem [shape: f32[18,18], index: 2, kind: input, shape index: {}]   ;;  %s4275_s0 = inlined_call_operand.vmem [shape: f32[2,133,18], index: 0, kind: input, shape index: {}]   ;;  %s4276_s1 = inlined_call_operand.vmem [shape: f32[133,1], index: 1, kind: input, shape index: {}]   ;;  %s4277_s5 = inlined_call_operand.vmem [shape: f32[18,448], index: 5, kind: input, shape index: {}]   ;;  %s4278_s3 = inlined_call_operand.vmem [shape: f32[133,18], index: 3, kind: input, shape index: {}]   ;;  %s4279_s4 = inlined_call_operand.vmem [shape: f32[133,18], index: 4, kind: input, shape index: {}]   ;;  %s4280_s6 = inlined_call_operand.vmem [shape: f32[133,448], index: 6, kind: input, shape index: {}]   ;;  %s4281_s7 = inlined_call_operand.vmem [shape: f32[2,133,448], index: 7, kind: output, shape index: {}]  }
   0x1   :  { %2102 = vmatprep.subr.bf16.mxu0 %v2175_v0  ;;  %v43_v1 = vld [vmem:[%s4274_s2] sm:$0xff]  ;;  %v44_v2 = vld [vmem:[%s4274_s2 + $0x8] sm:$0xff]  ;;  %2072 = vmatprep.mubr.msk.f32.mxu0 %vm2176_vm0, %v4282_v3  ;;  %v2243_v7 = vld [vmem:[%s4275_s0 + $0x10] sm:$0xff]  ;;  %v2178_v12 = vmov 0   ;;  %vm221_vm2 = vcmask 1041408   ;;  %vm209_vm3 = vcmask 143360  }
   0x2   :  { %v2228_v4 = vpack.c.bf16 %v44_v2, %v43_v1  ;;  %v2233_v5 = vld [vmem:[%s4275_s0] sm:$0xff]  ;;  %v2238_v6 = vld [vmem:[%s4275_s0 + $0x8] sm:$0xff]  ;;  %2105 = vmatprep.subr.bf16.mxu1 %v2175_v0  ;;  %2081 = vmatprep.mubr.msk.f32.mxu1 %vm2176_vm0, %v4282_v3  ;;  %v2251_v8 = vld [vmem:[%s4275_s0 + $0x18] sm:$0xff]  ;;  %v181_v11 = vsel %vm177_vm1, %v2243_v7, 0.0  ;;  %vm1003_vm4 = vcmask 523264   ;;  %vm1068_vm5 = vcmask 520192  }
   0x3   :  { %v178_v9 = vsel %vm177_vm1, %v2233_v5, 0.0  ;;  %v179_v10 = vsel %vm177_vm1, %v2238_v6, 0.0  ;;  %2134 = vset.pattern.permute.xlu0 %v2178_v12  ;;  %2135 = vset.pattern.permute.xlu1 %v2178_v12  ;;  %v2263_v13 = vld [vmem:[%s4275_s0 + $0x20] sm:$0xff]  ;;  %v2270_v15 = vld [vmem:[%s4274_s2 + $0x10] sm:$0x3]  ;;  %v183_v16 = vsel %vm177_vm1, %v2251_v8, 0.0 }
   0x4   :  { %2104 = vmatpush3.bf16.msra.mxu0 %v2228_v4  ;;  %v180_v14 = vadd.f32 %v179_v10, %v178_v9  ;;  %2107 = vmatpush3.bf16.msra.mxu1 %v2228_v4  ;;  %v2278_v17 = vld [vmem:[%s4275_s0 + $0x28] sm:$0xff]  ;;  %v185_v19 = vsel %vm177_vm1, %v2263_v13, 0.0  ;;  %v2287_v20 = vld [vmem:[%s4275_s0 + $0x30] sm:$0xff]  ;;  %v26_v22 = vld [vmem:[%s4276_s1] sm:$0xff] }
   0x5   :  { %2070 = vmatprep.subr.mxu0 %v4282_v3  ;;  %2079 = vmatprep.subr.mxu1 %v4282_v3  ;;  %v187_v23 = vsel %vm177_vm1, %v2278_v17, 0.0  ;;  %v28_v24 = vld [vmem:[%s4276_s1 + $0x10] sm:$0xff]  ;;  %v2302_v25 = vld [vmem:[%s4275_s0 + $0x38] sm:$0xff]  ;;  %v27_v27 = vld [vmem:[%s4276_s1 + $0x8] sm:$0xff]  ;;  %v189_v28 = vsel %vm177_vm1, %v2287_v20, 0.0 }
   0x6   :  { %v182_v18 = vadd.f32 %v181_v11, %v180_v14  ;;  %318 = vperm.xlu0 %2134, %v26_v22   ;;  %328 = vperm.xlu1 %2135, %v28_v24   ;;  %v29_v29 = vld [vmem:[%s4276_s1 + $0x18] sm:$0xff]  ;;  %v2315_v30 = vld [vmem:[%s4275_s0 + $0x40] sm:$0xff]  ;;  %v191_v32 = vsel %vm177_vm1, %v2302_v25, 0.0  ;;  %v2322_v33 = vld [vmem:[%s4275_s0 + $0x48] sm:$0xff] }
   0x7   :  { %v30_v35 = vld [vmem:[%s4276_s1 + $0x20] sm:$0xff]  ;;  %v193_v36 = vsel %vm177_vm1, %v2315_v30, 0.0  ;;  %v31_v37 = vld [vmem:[%s4276_s1 + $0x28] sm:$0xff]  ;;  %v2335_v38 = vld [vmem:[%s4275_s0 + $0x50] sm:$0xff]  ;;  %v195_v40 = vsel %vm177_vm1, %v2322_v33, 0.0 }
   0x8   :  { %2071 = vmatpush3.msk.msra.mxu0 %vm221_vm2, %v2270_v15  ;;  %v184_v21 = vadd.f32 %v183_v16, %v182_v18  ;;  %2080 = vmatpush3.msk.msra.mxu1 %vm221_vm2, %v2270_v15  ;;  %v2342_v41 = vld [vmem:[%s4275_s0 + $0x58] sm:$0xff]  ;;  %v32_v43 = vld [vmem:[%s4276_s1 + $0x30] sm:$0xff]  ;;  %v197_v44 = vsel %vm177_vm1, %v2335_v38, 0.0  ;;  %v2355_v46 = vld [vmem:[%s4275_s0 + $0x60] sm:$0xff] }
   0x9   :  { %v33_v45 = vld [vmem:[%s4276_s1 + $0x38] sm:$0xff]  ;;  %v199_v48 = vsel %vm177_vm1, %v2342_v41, 0.0  ;;  %v2362_v49 = vld [vmem:[%s4275_s0 + $0x68] sm:$0xff]  ;;  %v34_v51 = vld [vmem:[%s4276_s1 + $0x40] sm:$0xff]  ;;  %v201_v52 = vsel %vm177_vm1, %v2355_v46, 0.0 }
   0xa   :  { %v186_v26 = vadd.f32 %v185_v19, %v184_v21  ;;  %323 = vperm.xlu0 %2134, %v27_v27   ;;  %333 = vperm.xlu1 %2135, %v29_v29   ;;  %v35_v53 = vld [vmem:[%s4276_s1 + $0x48] sm:$0xff]  ;;  %v2375_v54 = vld [vmem:[%s4275_s0 + $0x70] sm:$0xff]  ;;  %v203_v56 = vsel %vm177_vm1, %v2362_v49, 0.0  ;;  %v2382_v57 = vld [vmem:[%s4275_s0 + $0x78] sm:$0xff]  ;;  %v295_v29 = vlaneseq }
   0xb   :  { %v36_v59 = vld [vmem:[%s4276_s1 + $0x50] sm:$0xff]  ;;  %v205_v60 = vsel %vm177_vm1, %v2375_v54, 0.0  ;;  %v37_v61 = vld [vmem:[%s4276_s1 + $0x58] sm:$0xff]  ;;  %v2395_v62 = vld [vmem:[%s4275_s0 + $0x80] sm:$0x1f]  ;;  %v207_v1 = vsel %vm177_vm1, %v2382_v57, 0.0 }
   0xc   :  { %v188_v31 = vadd.f32 %v187_v23, %v186_v26  ;;  %v38_v9 = vld [vmem:[%s4276_s1 + $0x60] sm:$0xff]  ;;  %v210_v10 = vsel %vm209_vm3, %v2395_v62, 0.0  ;;  %v39_v11 = vld [vmem:[%s4276_s1 + $0x68] sm:$0xff]  ;;  %v40_v16 = vld [vmem:[%s4276_s1 + $0x70] sm:$0xff] }
   0xd   :  { %v41_v18 = vld [vmem:[%s4276_s1 + $0x78] sm:$0xff]  ;;  %v42_v22 = vld [vmem:[%s4276_s1 + $0x80] sm:$0x1f] }
   0xe   :  { %v190_v34 = vadd.f32 %v189_v28, %v188_v31  ;;  %338 = vperm.xlu0 %2134, %v30_v35   ;;  %343 = vperm.xlu1 %2135, %v31_v37  }
  0x10   :  { %v192_v39 = vadd.f32 %v191_v32, %v190_v34  ;;  %v296_v32 = vshrl.u32 %v295_v29, 7 }
  0x12   :  { %v194_v42 = vadd.f32 %v193_v36, %v192_v39  ;;  %348 = vperm.xlu0 %2134, %v32_v43   ;;  %353 = vperm.xlu1 %2135, %v33_v45   ;;  %v2426_v36 = vsub.s32 0, %v296_v32 }
  0x14   :  { %v196_v47 = vadd.f32 %v195_v40, %v194_v42 }
  0x16   :  { %v198_v50 = vadd.f32 %v197_v44, %v196_v47  ;;  %358 = vperm.xlu0 %2134, %v34_v51   ;;  %363 = vperm.xlu1 %2135, %v35_v53  }
  0x18   :  { %v200_v55 = vadd.f32 %v199_v48, %v198_v50 }
  0x1a   :  { %v202_v58 = vadd.f32 %v201_v52, %v200_v55  ;;  %368 = vperm.xlu0 %2134, %v36_v59   ;;  %373 = vperm.xlu1 %2135, %v37_v61  }
  0x1c   :  { %v204_v63 = vadd.f32 %v203_v56, %v202_v58 }
  0x1e   :  { %v206_v2 = vadd.f32 %v205_v60, %v204_v63  ;;  %378 = vperm.xlu0 %2134, %v38_v9   ;;  %383 = vperm.xlu1 %2135, %v39_v11  }
  0x20   :  { %v208_v12 = vadd.f32 %v207_v1, %v206_v2 }
  0x22   :  { %v211_v14 = vadd.f32 %v210_v10, %v208_v12  ;;  %388 = vperm.xlu0 %2134, %v40_v16   ;;  %393 = vperm.xlu1 %2135, %v41_v18  }
  0x24   :  { %v212_v19 = vrot.slane %v211_v14, 4 }
  0x26   :  { %v213_v21 = vadd.f32 %v212_v19, %v211_v14  ;;  %398 = vperm.xlu0 %2134, %v42_v22  }
  0x28   :  { %v214_v23 = vrot.slane %v213_v21, 2 }
  0x2a   :  { %v215_v24 = vadd.f32 %v214_v23, %v213_v21 }
  0x2c   :  { %v216_v26 = vrot.slane %v215_v24, 1 }
  0x2e   :  { %v217_v27 = vadd.f32 %v216_v26, %v215_v24 }
  0x30   :  { %2073 = vmatmul.mubr.msk.f32.vlgmr.msra.gmra.mrb[0].mxu0 %vm177_vm1, %v217_v27 }
  0x31   :  { %730 = vmatprep.mubr.f32.mxu0 %v4282_v3 }
  0x85   :  { %v2418_v28 = vpop.permute.xlu0 %318  ;;  %v2420_v31 = vpop.permute.xlu1 %328 }
  0x89   :  { %v2422_v34 = vpop.permute.xlu0 %323  ;;  %v2424_v35 = vpop.permute.xlu1 %333 }
  0x8d   :  { %v2428_v39 = vpop.permute.xlu0 %338  ;;  %v2433_v43 = vpop.permute.xlu1 %343 }
  0x91   :  { %v2441_v48 = vpop.permute.xlu0 %348  ;;  %v2451_v53 = vpop.permute.xlu1 %353 }
  0x95   :  { %v2467_v58 = vpop.permute.xlu0 %358  ;;  %v2476_v61 = vpop.permute.xlu1 %363 }
  0x99   :  { %v2495_v14 = vpop.permute.xlu0 %368  ;;  %v2505_v22 = vpop.permute.xlu1 %373 }
 0x103   :  { %v291_v37 = vpop.f32.mrb[0].mxu0 }
 0x104   :  { %v2431_v40 = vrot.slane %v291_v37, %v2426_v36  ;;  %v2074_v42 = vpop.f32.mrb[1].mxu0 }
 0x106   :  { %v299_v44 = vsub.f32 %v2233_v5, %v2431_v40  ;;  %v300_v45 = vsub.f32 %v2238_v6, %v2431_v40  ;;  %v301_v47 = vsub.f32 %v2243_v7, %v2431_v40  ;;  %v302_v51 = vsub.f32 %v2251_v8, %v2431_v40 }
 0x107   :  { %v303_v5 = vsub.f32 %v2263_v13, %v2431_v40  ;;  %v304_v55 = vsub.f32 %v2278_v17, %v2431_v40  ;;  %v305_v13 = vsub.f32 %v2287_v20, %v2431_v40  ;;  %v306_v63 = vsub.f32 %v2302_v25, %v2431_v40 }
 0x108   :  { %v2444_v50 = vmul.f32 %v2418_v28, %v299_v44  ;;  %v2449_v52 = vmul.f32 %v2422_v34, %v300_v45  ;;  %v2456_v6 = vmul.f32 %v2420_v31, %v301_v47  ;;  %v2463_v56 = vmul.f32 %v2424_v35, %v302_v51  ;;  %v2523_v44 = vpop.permute.xlu0 %378 }
 0x109   :  { %v2472_v59 = vmul.f32 %v2428_v39, %v303_v5  ;;  %v2482_v1 = vmul.f32 %v2433_v43, %v304_v55  ;;  %v307_v10 = vsub.f32 %v2315_v30, %v2431_v40  ;;  %v2490_v11 = vmul.f32 %v2441_v48, %v305_v13 }
 0x10a   :  { %v418_v7 = vmul.f32 %v2444_v50, %v2444_v50  ;;  %v419_v8 = vmul.f32 %v2449_v52, %v2449_v52  ;;  %v420_v60 = vmul.f32 %v2456_v6, %v2456_v6  ;;  %v421_v2 = vmul.f32 %v2463_v56, %v2463_v56 }
 0x10b   :  { %v422_v12 = vmul.f32 %v2472_v59, %v2472_v59  ;;  %v308_v18 = vsub.f32 %v2322_v33, %v2431_v40  ;;  %v2500_v19 = vmul.f32 %v2451_v53, %v306_v63  ;;  %v423_v30 = vmul.f32 %v2482_v1, %v2482_v1 }
 0x10c   :  { %v435_v17 = vsel %vm177_vm1, %v418_v7, 0.0  ;;  %v436_v20 = vsel %vm177_vm1, %v419_v8, 0.0  ;;  %v438_v25 = vsel %vm177_vm1, %v420_v60, 0.0  ;;  %v440_v21 = vsel %vm177_vm1, %v421_v2, 0.0  ;;  %v2533_v7 = vpop.permute.xlu1 %383 }
 0x10d   :  { %v437_v9 = vadd.f32 %v436_v20, %v435_v17  ;;  %v309_v24 = vsub.f32 %v2335_v38, %v2431_v40  ;;  %v2510_v26 = vmul.f32 %v2467_v58, %v307_v10  ;;  %v424_v33 = vmul.f32 %v2490_v11, %v2490_v11 }
 0x10e   :  { %v442_v27 = vsel %vm177_vm1, %v422_v12, 0.0  ;;  %v310_v32 = vsub.f32 %v2342_v41, %v2431_v40  ;;  %v2518_v37 = vmul.f32 %v2476_v61, %v308_v18  ;;  %v425_v42 = vmul.f32 %v2500_v19, %v2500_v19 }
 0x10f   :  { %v439_v16 = vadd.f32 %v438_v25, %v437_v9  ;;  %v444_v38 = vsel %vm177_vm1, %v423_v30, 0.0  ;;  %v311_v47 = vsub.f32 %v2355_v46, %v2431_v40  ;;  %v2528_v51 = vmul.f32 %v2495_v14, %v309_v24  ;;  %v2551_v9 = vpop.permute.xlu0 %388 }
 0x110   :  { %v426_v41 = vmul.f32 %v2510_v26, %v2510_v26  ;;  %v446_v5 = vsel %vm177_vm1, %v424_v33, 0.0  ;;  %v312_v8 = vsub.f32 %v2362_v49, %v2431_v40  ;;  %v2538_v13 = vmul.f32 %v2505_v22, %v310_v32  ;;  %v2561_v18 = vpop.permute.xlu1 %393 }
 0x111   :  { %v441_v23 = vadd.f32 %v440_v21, %v439_v16  ;;  %v427_v46 = vmul.f32 %v2518_v37, %v2518_v37  ;;  %v448_v60 = vsel %vm177_vm1, %v425_v42, 0.0  ;;  %v313_v63 = vsub.f32 %v2375_v54, %v2431_v40 }
 0x112   :  { %v2546_v2 = vmul.f32 %v2523_v44, %v311_v47  ;;  %v428_v20 = vmul.f32 %v2528_v51, %v2528_v51  ;;  %v450_v49 = vsel %vm177_vm1, %v426_v41, 0.0  ;;  %v314_v12 = vsub.f32 %v2382_v57, %v2431_v40 }
 0x113   :  { %v443_v29 = vadd.f32 %v442_v27, %v441_v23  ;;  %v2556_v25 = vmul.f32 %v2533_v7, %v312_v8  ;;  %v429_v54 = vmul.f32 %v2538_v13, %v2538_v13  ;;  %v452_v16 = vsel %vm177_vm1, %v427_v46, 0.0  ;;  %v2577_v42 = vpop.permute.xlu0 %398 }
 0x114   :  { %v315_v21 = vsub.f32 %v2395_v62, %v2431_v40  ;;  %v2566_v23 = vmul.f32 %v2551_v9, %v313_v63  ;;  %v430_v57 = vmul.f32 %v2546_v2, %v2546_v2  ;;  %v454_v24 = vsel %vm177_vm1, %v428_v20, 0.0 }
 0x115   :  { %v445_v45 = vadd.f32 %v444_v38, %v443_v29  ;;  %v2572_v27 = vmul.f32 %v2561_v18, %v314_v12  ;;  %v431_v29 = vmul.f32 %v2556_v25, %v2556_v25  ;;  %v456_v32 = vsel %vm177_vm1, %v429_v54, 0.0 }
 0x116   :  { %v2580_v40 = vmul.f32 %v2577_v42, %v315_v21  ;;  %v432_v38 = vmul.f32 %v2566_v23, %v2566_v23 }
 0x117   :  { %v447_v55 = vadd.f32 %v446_v5, %v445_v45  ;;  %v458_v45 = vsel %vm177_vm1, %v430_v57, 0.0  ;;  %v433_v41 = vmul.f32 %v2572_v27, %v2572_v27  ;;  %v460_v5 = vsel %vm177_vm1, %v431_v29, 0.0  ;;  %v81_v57 = vld [vmem:[%s4277_s5 + $0x8] sm:$0xff] }
 0x118   :  { %v434_v8 = vmul.f32 %v2580_v40, %v2580_v40  ;;  %v462_v46 = vsel %vm177_vm1, %v432_v38, 0.0  ;;  %v87_v38 = vld [vmem:[%s4277_s5 + $0x38] sm:$0xff] }
 0x119   :  { %v449_v17 = vadd.f32 %v448_v60, %v447_v55 }
 0x11a   :  { %v466_v20 = vsel %vm209_vm3, %v434_v8, 0.0 }
 0x11b   :  { %v451_v10 = vadd.f32 %v450_v49, %v449_v17  ;;  %v464_v17 = vsel %vm177_vm1, %v433_v41, 0.0  ;;  %v82_v41 = vld [vmem:[%s4277_s5 + $0x10] sm:$0xff] }
 0x11d   :  { %v453_v30 = vadd.f32 %v452_v16, %v451_v10 }
 0x11f   :  { %v455_v33 = vadd.f32 %v454_v24, %v453_v30  ;;  %v85_v24 = vld [vmem:[%s4277_s5 + $0x28] sm:$0xff] }
 0x120   :  { %v2604_v29 = vpack.c.bf16 %v85_v24, %v81_v57  ;;  %v2679_v57 = vld [vmem:[%s4275_s0 + $0xa0] sm:$0xff] }
 0x121   :  { %v457_v62 = vadd.f32 %v456_v32, %v455_v33  ;;  %v80_v33 = vld [vmem:[%s4277_s5] sm:$0xff] }
 0x122   :  { %v84_v32 = vld [vmem:[%s4277_s5 + $0x20] sm:$0xff]  ;;  %2109 = vmatprep.subr.bf16.mxu0 %v2604_v29 }
 0x123   :  { %v459_v47 = vadd.f32 %v458_v45, %v457_v62  ;;  %v83_v62 = vld [vmem:[%s4277_s5 + $0x18] sm:$0xff]  ;;  %v2615_v45 = vpack.c.bf16 %v84_v32, %v80_v33  ;;  %v1093_v33 = vsel %vm177_vm1, %v2679_v57, 0.0  ;;  %v2686_v32 = vld [vmem:[%s4275_s0 + $0xa8] sm:$0xff] }
 0x125   :  { %v461_v55 = vadd.f32 %v460_v5, %v459_v47  ;;  %v2617_v47 = vpack.c.bf16 %v87_v38, %v83_v62  ;;  %v86_v5 = vld [vmem:[%s4277_s5 + $0x30] sm:$0xff]  ;;  %2111 = vmatpush1.bf16.msra.mxu0 %v2615_v45  ;;  %v1095_v38 = vsel %vm177_vm1, %v2686_v32, 0.0 }
 0x126   :  { %v2631_v8 = vpack.c.bf16 %v86_v5, %v82_v41  ;;  %v2693_v41 = vld [vmem:[%s4275_s0 + $0xb0] sm:$0xff] }
 0x127   :  { %v463_v60 = vadd.f32 %v462_v46, %v461_v55  ;;  %v2628_v55 = vld [vmem:[%s4277_s5 + $0x48] sm:$0x3]  ;;  %v91_v46 = vld [vmem:[%s4277_s5 + $0x58] sm:$0x3]  ;;  %2113 = vmatprep.subr.bf16.mxu1 %v2617_v47 }
 0x128   :  { %1885 = vmatprep.subr.msk.mxu0 %vm221_vm2, %v2628_v55 }
 0x129   :  { %v465_v63 = vadd.f32 %v464_v17, %v463_v60  ;;  %v2644_v60 = vld [vmem:[%s4277_s5 + $0x40] sm:$0x3]  ;;  %v90_v17 = vld [vmem:[%s4277_s5 + $0x50] sm:$0x3] }
 0x12a   :  { %1886 = vmatpush1.msk.msra.mxu0 %vm221_vm2, %v2644_v60 }
 0x12b   :  { %v467_v49 = vadd.f32 %v466_v20, %v465_v63  ;;  %2116 = vmatprep.subr.bf16.mxu0 %v2175_v0  ;;  %v2658_v63 = vld [vmem:[%s4275_s0 + $0x88] sm:$0xff]  ;;  %v2663_v20 = vld [vmem:[%s4275_s0 + $0x90] sm:$0xff] }
 0x12d   :  { %v468_v10 = vrot.slane %v467_v49, 4 }
 0x12f   :  { %v469_v12 = vadd.f32 %v468_v10, %v467_v49  ;;  %v1088_v49 = vsel %vm177_vm1, %v2658_v63, 0.0  ;;  %v1089_v10 = vsel %vm177_vm1, %v2663_v20, 0.0 }
 0x131   :  { %v470_v54 = vrot.slane %v469_v12, 2 }
 0x133   :  { %v471_v16 = vadd.f32 %v470_v54, %v469_v12 }
 0x135   :  { %v472_v30 = vrot.slane %v471_v16, 1 }
 0x137   :  { %v473_v21 = vadd.f32 %v472_v30, %v471_v16  ;;  %v1090_v30 = vadd.f32 %v1089_v10, %v1088_v49  ;;  %v46_v49 = vld [vmem:[%s4278_s3] sm:$0xff]  ;;  %v1097_v10 = vsel %vm177_vm1, %v2693_v41, 0.0 }
 0x139   :  { %2082 = vmatmul.mubr.msk.f32.vlgmr.msra.gmra.mrb[0].mxu1 %vm177_vm1, %v473_v21 }
 0x13a   :  { %897 = vmatprep.mubr.f32.mxu1 %v4282_v3  ;;  %2115 = vmatpush1.bf16.msra.mxu1 %v2631_v8  ;;  %v64_v3 = vld [vmem:[%s4279_s4 + $0x8] sm:$0xff] }
 0x13b   :  { %1904 = vmatprep.subr.msk.mxu1 %vm221_vm2, %v91_v46 }
 0x13e   :  { %1905 = vmatpush1.msk.msra.mxu1 %vm221_vm2, %v90_v17 }
 0x13f   :  { %2119 = vmatprep.subr.bf16.mxu1 %v2175_v0  ;;  %v2672_v0 = vld [vmem:[%s4275_s0 + $0x98] sm:$0xff] }
 0x140   :  { %v1091_v21 = vsel %vm177_vm1, %v2672_v0, 0.0 }
 0x141   :  { %v1092_v24 = vadd.f32 %v1091_v21, %v1090_v30  ;;  %v63_v30 = vld [vmem:[%s4279_s4] sm:$0xff]  ;;  %v47_v21 = vld [vmem:[%s4278_s3 + $0x8] sm:$0xff] }
 0x143   :  { %v1094_v62 = vadd.f32 %v1093_v33, %v1092_v24 }
 0x145   :  { %v1096_v17 = vadd.f32 %v1095_v38, %v1094_v62 }
 0x147   :  { %v1098_v33 = vadd.f32 %v1097_v10, %v1096_v17  ;;  %v48_v17 = vld [vmem:[%s4278_s3 + $0x10] sm:$0xff] }
 0x20c   :  { %v543_v12 = vpop.f32.mrb[0].mxu1 }
 0x20d   :  { %v544_v54 = vadd.f32 1e-05, %v543_v12  ;;  %v2083_v16 = vpop.f32.mrb[1].mxu1 }
 0x20e   :  { %v2710_v16 = vld [vmem:[%s4275_s0 + $0xb8] sm:$0xff] }
 0x20f   :  { %2136 = vrsqrt.f32 %v544_v54 }
 0x219   :  { %v2137_v5 = vpop.eup %2136 }
 0x21a   :  { %v2696_v46 = vrot.slane %v2137_v5, %v2426_v36  ;;  %v2725_v5 = vld [vmem:[%s4275_s0 + $0xc0] sm:$0xff] }
 0x21b   :  { %v1101_v10 = vsel %vm177_vm1, %v2725_v5, 0.0 }
 0x21c   :  { %v552_v12 = vmul.f32 %v2696_v46, %v2444_v50  ;;  %v553_v54 = vmul.f32 %v2696_v46, %v2449_v52  ;;  %v1099_v50 = vsel %vm177_vm1, %v2710_v16, 0.0  ;;  %v554_v38 = vmul.f32 %v2696_v46, %v2456_v6 }
 0x21d   :  { %v4336_v6 = vmov 0.0  }
 0x21e   :  { %v569_v24 = vmul.f32 %v552_v12, %v46_v49  ;;  %v570_v52 = vmul.f32 %v553_v54, %v47_v21  ;;  %v1100_v49 = vadd.f32 %v1099_v50, %v1098_v33  ;;  %v571_v54 = vmul.f32 %v554_v38, %v48_v17  ;;  %v2746_v21 = vld [vmem:[%s4275_s0 + $0xc8] sm:$0xff]  ;;  %v49_v33 = vld [vmem:[%s4278_s3 + $0x18] sm:$0xff]  ;;  %v50_v17 = vld [vmem:[%s4278_s3 + $0x20] sm:$0xff] }
 0x21f   :  { %v66_v38 = vld [vmem:[%s4279_s4 + $0x18] sm:$0xff] }
 0x220   :  { %v586_v62 = vadd.f32 %v569_v24, %v63_v30  ;;  %v587_v12 = vadd.f32 %v570_v52, %v64_v3  ;;  %v555_v30 = vmul.f32 %v2696_v46, %v2463_v56  ;;  %v65_v24 = vld [vmem:[%s4279_s4 + $0x10] sm:$0xff]  ;;  %v1102_v3 = vadd.f32 %v1101_v10, %v1100_v49 }
 0x221   :  { %v1103_v56 = vsel %vm177_vm1, %v2746_v21, 0.0  ;;  %v588_v50 = vadd.f32 %v571_v54, %v65_v24  ;;  %v556_v52 = vmul.f32 %v2696_v46, %v2472_v59  ;;  %v557_v54 = vmul.f32 %v2696_v46, %v2482_v1 }
 0x222   :  { %1887 = vmatmul.mubr.msk.f32.vlgmr.msra.gmra.mrb[2].mxu0 %vm177_vm1, %v586_v62  ;;  %1906 = vmatmul.mubr.msk.f32.vlgmr.msra.gmra.mrb[2].mxu1 %vm177_vm1, %v586_v62  ;;  %v572_v62 = vmul.f32 %v555_v30, %v49_v33  ;;  %v1104_v59 = vadd.f32 %v1103_v56, %v1102_v3  ;;  %v51_v30 = vld [vmem:[%s4278_s3 + $0x28] sm:$0xff]  ;;  %v558_v3 = vmul.f32 %v2696_v46, %v2490_v11  ;;  %v2811_v56 = vld [vmem:[%s4275_s0 + $0xe0] sm:$0xff] }
 0x223   :  { %2118 = vmatpush3.bf16.msra.mxu0 %v2228_v4  ;;  %736 = vmatprep.mubr.f32.mxu0 %v4336_v6  ;;  %v574_v33 = vmul.f32 %v557_v54, %v51_v30  ;;  %v1109_v11 = vsel %vm177_vm1, %v2811_v56, 0.0 }
 0x224   :  { %903 = vmatprep.mubr.f32.mxu1 %v4336_v6  ;;  %2088 = vmatprep.subr.mxu0 %v4336_v6  ;;  %v589_v10 = vadd.f32 %v572_v62, %v66_v38  ;;  %v52_v62 = vld [vmem:[%s4278_s3 + $0x30] sm:$0xff] }
 0x225   :  { %2121 = vmatpush3.bf16.msra.mxu1 %v2228_v4  ;;  %v2768_v4 = vld [vmem:[%s4275_s0 + $0xd0] sm:$0xff] }
 0x226   :  { %1888 = vmatmul.mubr.msk.f32.gmra.mrb[4].mxu0 %vm177_vm1, %v587_v12  ;;  %1907 = vmatmul.mubr.msk.f32.gmra.mrb[4].mxu1 %vm177_vm1, %v587_v12  ;;  %v1105_v49 = vsel %vm177_vm1, %v2768_v4, 0.0  ;;  %v573_v12 = vmul.f32 %v556_v52, %v50_v17  ;;  %v575_v17 = vmul.f32 %v558_v3, %v52_v62 }
 0x227   :  { %742 = vmatprep.mubr.f32.mxu0 %v4336_v6  ;;  %909 = vmatprep.mubr.f32.mxu1 %v4336_v6  ;;  %v1106_v1 = vadd.f32 %v1105_v49, %v1104_v59  ;;  %v559_v59 = vmul.f32 %v2696_v46, %v2500_v19  ;;  %v2830_v49 = vld [vmem:[%s4275_s0 + $0xe8] sm:$0xff] }
 0x228   :  { %2089 = vmatpush3.msk.msra.mxu0 %vm221_vm2, %v2270_v15  ;;  %2097 = vmatprep.subr.mxu1 %v4336_v6  ;;  %v1111_v19 = vsel %vm177_vm1, %v2830_v49, 0.0 }
 0x229   :  { %2098 = vmatpush3.msk.msra.mxu1 %vm221_vm2, %v2270_v15  ;;  %2123 = vmatprep.subr.bf16.mxu0 %v2604_v29  ;;  %v2791_v15 = vld [vmem:[%s4275_s0 + $0xd8] sm:$0xff]  ;;  %v67_v29 = vld [vmem:[%s4279_s4 + $0x20] sm:$0xff] }
 0x22a   :  { %1889 = vmatmul.mubr.msk.f32.gmra.mrb[6].mxu0 %vm177_vm1, %v588_v50  ;;  %1908 = vmatmul.mubr.msk.f32.gmra.mrb[6].mxu1 %vm177_vm1, %v588_v50  ;;  %v590_v24 = vadd.f32 %v573_v12, %v67_v29  ;;  %v68_v50 = vld [vmem:[%s4279_s4 + $0x28] sm:$0xff]  ;;  %v53_v12 = vld [vmem:[%s4278_s3 + $0x38] sm:$0xff] }
 0x22b   :  { %748 = vmatprep.mubr.f32.mxu0 %v4336_v6  ;;  %915 = vmatprep.mubr.f32.mxu1 %v4336_v6  ;;  %v591_v38 = vadd.f32 %v574_v33, %v68_v50  ;;  %v576_v30 = vmul.f32 %v559_v59, %v53_v12  ;;  %v54_v33 = vld [vmem:[%s4278_s3 + $0x40] sm:$0xff] }
 0x22c   :  { %2127 = vmatprep.subr.bf16.mxu1 %v2617_v47  ;;  %v1107_v47 = vsel %vm177_vm1, %v2791_v15, 0.0 }
 0x22d   :  { %v1108_v52 = vadd.f32 %v1107_v47, %v1106_v1  ;;  %v560_v1 = vmul.f32 %v2696_v46, %v2510_v26  ;;  %v2849_v47 = vld [vmem:[%s4275_s0 + $0xf0] sm:$0xff] }
 0x22e   :  { %1890 = vmatmul.mubr.msk.f32.gmra.mrb[8].mxu0 %vm177_vm1, %v589_v10  ;;  %1909 = vmatmul.mubr.msk.f32.gmra.mrb[8].mxu1 %vm177_vm1, %v589_v10  ;;  %v69_v10 = vld [vmem:[%s4279_s4 + $0x30] sm:$0xff]  ;;  %v1113_v26 = vsel %vm177_vm1, %v2849_v47, 0.0 }
 0x22f   :  { %754 = vmatprep.mubr.f32.mxu0 %v4336_v6  ;;  %921 = vmatprep.mubr.f32.mxu1 %v4336_v6  ;;  %v1110_v54 = vadd.f32 %v1109_v11, %v1108_v52  ;;  %v592_v29 = vadd.f32 %v575_v17, %v69_v10  ;;  %v577_v62 = vmul.f32 %v560_v1, %v54_v33  ;;  %v2868_v11 = vld [vmem:[%s4275_s0 + $0xf8] sm:$0xff]  ;;  %v55_v17 = vld [vmem:[%s4278_s3 + $0x48] sm:$0xff] }
 0x230   :  { %v561_v52 = vmul.f32 %v2696_v46, %v2518_v37  ;;  %v1115_v37 = vsel %vm177_vm1, %v2868_v11, 0.0 }
 0x231   :  { %v1112_v3 = vadd.f32 %v1111_v19, %v1110_v54  ;;  %v562_v54 = vmul.f32 %v2696_v46, %v2528_v51  ;;  %v2887_v19 = vld [vmem:[%s4275_s0 + $0x100] sm:$0xff] }
 0x232   :  { %1891 = vmatmul.mubr.msk.f32.gmra.mrb[10].mxu0 %vm177_vm1, %v590_v24  ;;  %1910 = vmatmul.mubr.msk.f32.gmra.mrb[10].mxu1 %vm177_vm1, %v590_v24  ;;  %v70_v24 = vld [vmem:[%s4279_s4 + $0x38] sm:$0xff]  ;;  %v578_v12 = vmul.f32 %v561_v52, %v55_v17  ;;  %v1117_v51 = vsel %vm177_vm1, %v2887_v19, 0.0 }
 0x233   :  { %760 = vmatprep.mubr.f32.mxu0 %v4336_v6  ;;  %927 = vmatprep.mubr.f32.mxu1 %v4336_v6  ;;  %v593_v50 = vadd.f32 %v576_v30, %v70_v24  ;;  %v1114_v59 = vadd.f32 %v1113_v26, %v1112_v3  ;;  %v56_v30 = vld [vmem:[%s4278_s3 + $0x50] sm:$0xff]  ;;  %v2904_v24 = vld [vmem:[%s4275_s0 + $0x108] sm:$0x1f]  ;;  %v563_v26 = vmul.f32 %v2696_v46, %v2538_v13 }
 0x234   :  { %v579_v3 = vmul.f32 %v562_v54, %v56_v30  ;;  %v75_v30 = vld [vmem:[%s4279_s4 + $0x60] sm:$0xff] }
 0x235   :  { %v1116_v1 = vadd.f32 %v1115_v37, %v1114_v59  ;;  %v564_v59 = vmul.f32 %v2696_v46, %v2546_v2  ;;  %v74_v37 = vld [vmem:[%s4279_s4 + $0x58] sm:$0xff]  ;;  %v565_v2 = vmul.f32 %v2696_v46, %v2556_v25  ;;  %v566_v25 = vmul.f32 %v2696_v46, %v2566_v23 }
 0x236   :  { %1892 = vmatmul.mubr.msk.f32.gmra.mrb[12].mxu0 %vm177_vm1, %v591_v38  ;;  %1911 = vmatmul.mubr.msk.f32.gmra.mrb[12].mxu1 %vm177_vm1, %v591_v38  ;;  %v71_v38 = vld [vmem:[%s4279_s4 + $0x40] sm:$0xff]  ;;  %v567_v23 = vmul.f32 %v2696_v46, %v2572_v27  ;;  %v568_v27 = vmul.f32 %v2696_v46, %v2580_v40 }
 0x237   :  { %766 = vmatprep.mubr.f32.mxu0 %v4336_v6  ;;  %933 = vmatprep.mubr.f32.mxu1 %v4336_v6  ;;  %v594_v10 = vadd.f32 %v577_v62, %v71_v38  ;;  %v57_v62 = vld [vmem:[%s4278_s3 + $0x58] sm:$0xff]  ;;  %v1118_v52 = vadd.f32 %v1117_v51, %v1116_v1  ;;  %v1119_v38 = vsel %vm209_vm3, %v2904_v24, 0.0  ;;  %v59_v1 = vld [vmem:[%s4278_s3 + $0x68] sm:$0xff]  ;;  %v2983_v40 = vld [vmem:[%s4279_s4 + $0x80] sm:$0x1f] }
 0x238   :  { %v580_v17 = vmul.f32 %v563_v26, %v57_v62  ;;  %v76_v26 = vld [vmem:[%s4279_s4 + $0x68] sm:$0xff] }
 0x23a   :  { %1893 = vmatmul.mubr.msk.f32.gmra.mrb[14].mxu0 %vm177_vm1, %v592_v29  ;;  %1912 = vmatmul.mubr.msk.f32.gmra.mrb[14].mxu1 %vm177_vm1, %v592_v29  ;;  %v72_v29 = vld [vmem:[%s4279_s4 + $0x48] sm:$0xff]  ;;  %v597_v54 = vadd.f32 %v580_v17, %v74_v37  ;;  %v61_v17 = vld [vmem:[%s4278_s3 + $0x78] sm:$0xff] }
 0x23b   :  { %772 = vmatprep.mubr.f32.mxu0 %v4336_v6  ;;  %939 = vmatprep.mubr.f32.mxu1 %v4336_v6  ;;  %v595_v33 = vadd.f32 %v578_v12, %v72_v29  ;;  %v1120_v12 = vadd.f32 %v1119_v38, %v1118_v52 }
 0x23d   :  { %v1121_v51 = vrot.slane %v1120_v12, 4 }
 0x23e   :  { %1894 = vmatmul.mubr.msk.f32.gmra.mrb[16].mxu0 %vm177_vm1, %v593_v50  ;;  %1913 = vmatmul.mubr.msk.f32.gmra.mrb[16].mxu1 %vm177_vm1, %v593_v50  ;;  %v73_v50 = vld [vmem:[%s4279_s4 + $0x50] sm:$0xff] }
 0x23f   :  { %778 = vmatprep.mubr.f32.mxu0 %v4336_v6  ;;  %945 = vmatprep.mubr.f32.mxu1 %v4336_v6  ;;  %v596_v13 = vadd.f32 %v579_v3, %v73_v50  ;;  %v582_v3 = vmul.f32 %v565_v2, %v59_v1  ;;  %v60_v50 = vld [vmem:[%s4278_s3 + $0x70] sm:$0xff]  ;;  %v1122_v62 = vadd.f32 %v1121_v51, %v1120_v12  ;;  %v78_v12 = vld [vmem:[%s4279_s4 + $0x78] sm:$0xff] }
 0x240   :  { %v583_v38 = vmul.f32 %v566_v25, %v60_v50 }
 0x241   :  { %v599_v52 = vadd.f32 %v582_v3, %v76_v26  ;;  %v3011_v3 = vld [vmem:[%s4280_s6 + $0x10] sm:$0xff] }
 0x242   :  { %1895 = vmatmul.mubr.msk.f32.gmra.mrb[18].mxu0 %vm177_vm1, %v594_v10  ;;  %1914 = vmatmul.mubr.msk.f32.gmra.mrb[18].mxu1 %vm177_vm1, %v594_v10  ;;  %v58_v10 = vld [vmem:[%s4278_s3 + $0x60] sm:$0xff] }
 0x243   :  { %784 = vmatprep.mubr.f32.mxu0 %v4336_v6  ;;  %951 = vmatprep.mubr.f32.mxu1 %v4336_v6  ;;  %v581_v29 = vmul.f32 %v564_v59, %v58_v10  ;;  %v1123_v59 = vrot.slane %v1122_v62, 2  ;;  %v584_v10 = vmul.f32 %v567_v23, %v61_v17  ;;  %v3035_v17 = vld [vmem:[%s4280_s6 + $0x30] sm:$0xff] }
 0x245   :  { %v601_v2 = vadd.f32 %v584_v10, %v78_v12 }
 0x246   :  { %1896 = vmatmul.mubr.msk.f32.gmra.mrb[20].mxu0 %vm177_vm1, %v595_v33  ;;  %1915 = vmatmul.mubr.msk.f32.gmra.mrb[20].mxu1 %vm177_vm1, %v595_v33  ;;  %v598_v33 = vadd.f32 %v581_v29, %v75_v30  ;;  %v1124_v29 = vadd.f32 %v1123_v59, %v1122_v62  ;;  %v3046_v59 = vld [vmem:[%s4280_s6 + $0x28] sm:$0xff] }
 0x247   :  { %790 = vmatprep.mubr.f32.mxu0 %v4336_v6  ;;  %957 = vmatprep.mubr.f32.mxu1 %v4336_v6 }
 0x248   :  { %v1125_v46 = vrot.slane %v1124_v29, 1 }
 0x24a   :  { %1897 = vmatmul.mubr.msk.f32.gmra.mrb[22].mxu0 %vm177_vm1, %v596_v13  ;;  %1916 = vmatmul.mubr.msk.f32.gmra.mrb[22].mxu1 %vm177_vm1, %v596_v13  ;;  %v77_v13 = vld [vmem:[%s4279_s4 + $0x70] sm:$0xff]  ;;  %v1126_v51 = vadd.f32 %v1125_v46, %v1124_v29 }
 0x24b   :  { %796 = vmatprep.mubr.f32.mxu0 %v4336_v6  ;;  %963 = vmatprep.mubr.f32.mxu1 %v4336_v6  ;;  %v600_v37 = vadd.f32 %v583_v38, %v77_v13  ;;  %v3030_v13 = vld [vmem:[%s4280_s6 + $0x20] sm:$0xff] }
 0x24e   :  { %1898 = vmatmul.mubr.msk.f32.gmra.mrb[24].mxu0 %vm177_vm1, %v597_v54  ;;  %1917 = vmatmul.mubr.msk.f32.gmra.mrb[24].mxu1 %vm177_vm1, %v597_v54  ;;  %v62_v54 = vld [vmem:[%s4278_s3 + $0x80] sm:$0x1f] }
 0x24f   :  { %802 = vmatprep.mubr.f32.mxu0 %v4336_v6  ;;  %969 = vmatprep.mubr.f32.mxu1 %v4336_v6  ;;  %v585_v30 = vmul.f32 %v568_v27, %v62_v54 }
 0x251   :  { %v602_v1 = vadd.f32 %v585_v30, %v2983_v40 }
 0x252   :  { %1899 = vmatmul.mubr.msk.f32.gmra.mrb[26].mxu0 %vm177_vm1, %v598_v33  ;;  %1918 = vmatmul.mubr.msk.f32.gmra.mrb[26].mxu1 %vm177_vm1, %v598_v33  ;;  %v3006_v33 = vld [vmem:[%s4280_s6] sm:$0xff] }
 0x253   :  { %808 = vmatprep.mubr.f32.mxu0 %v4336_v6  ;;  %975 = vmatprep.mubr.f32.mxu1 %v4336_v6 }
 0x256   :  { %1900 = vmatmul.mubr.msk.f32.gmra.mrb[28].mxu0 %vm177_vm1, %v599_v52  ;;  %1919 = vmatmul.mubr.msk.f32.gmra.mrb[28].mxu1 %vm177_vm1, %v599_v52 }
 0x257   :  { %814 = vmatprep.mubr.f32.mxu0 %v4336_v6  ;;  %981 = vmatprep.mubr.f32.mxu1 %v4336_v6 }
 0x25a   :  { %1901 = vmatmul.mubr.msk.f32.gmra.mrb[30].mxu0 %vm177_vm1, %v600_v37  ;;  %1920 = vmatmul.mubr.msk.f32.gmra.mrb[30].mxu1 %vm177_vm1, %v600_v37  ;;  %v3051_v37 = vld [vmem:[%s4280_s6 + $0x38] sm:$0xff] }
 0x25b   :  { %820 = vmatprep.mubr.f32.mxu0 %v4336_v6  ;;  %987 = vmatprep.mubr.f32.mxu1 %v4336_v6 }
 0x25e   :  { %1902 = vmatmul.mubr.msk.f32.gmra.mrb[32].mxu0 %vm177_vm1, %v601_v2  ;;  %1921 = vmatmul.mubr.msk.f32.gmra.mrb[32].mxu1 %vm177_vm1, %v601_v2 }
 0x25f   :  { %826 = vmatprep.mubr.f32.mxu0 %v4336_v6  ;;  %993 = vmatprep.mubr.f32.mxu1 %v4336_v6 }
 0x262   :  { %1903 = vmatmul.mubr.msk.f32.gmra.mrb[34].mxu0 %vm177_vm1, %v602_v1  ;;  %1922 = vmatmul.mubr.msk.f32.gmra.mrb[34].mxu1 %vm177_vm1, %v602_v1  ;;  %v3067_v1 = vld [vmem:[%s4280_s6 + $0x40] sm:$0xff] }
 0x263   :  { %2090 = vmatprep.mubr.msk.f32.mxu0 %vm2176_vm0, %v4336_v6  ;;  %2099 = vmatprep.mubr.msk.f32.mxu1 %vm2176_vm0, %v4336_v6 }
 0x266   :  { %2091 = vmatmul.mubr.msk.f32.vlgmr.msra.gmra.mrb[36].mxu0 %vm177_vm1, %v1126_v51  ;;  %v3072_v51 = vld [vmem:[%s4280_s6 + $0x50] sm:$0xff] }
 0x267   :  { %2125 = vmatpush1.bf16.msra.mxu0 %v2615_v45  ;;  %1538 = vmatprep.mubr.f32.mxu0 %v4336_v6  ;;  %v3016_v45 = vld [vmem:[%s4280_s6 + $0x8] sm:$0xff] }
 0x268   :  { %1944 = vmatprep.subr.msk.mxu0 %vm221_vm2, %v2628_v55  ;;  %v3021_v55 = vld [vmem:[%s4280_s6 + $0x18] sm:$0xff] }
 0x26b   :  { %1945 = vmatpush1.msk.msra.mxu0 %vm221_vm2, %v2644_v60 }
 0x2f5   :  { %v732_v60 = vpop.f32.mrb[2].mxu0  ;;  %v899_v25 = vpop.f32.mrb[2].mxu1 }
 0x2f6   :  { %v733_v26 = vadd.f32 %v732_v60, %v3006_v33  ;;  %v900_v50 = vadd.f32 %v899_v25, %v3011_v3  ;;  %v734_v62 = vpop.f32.mrb[3].mxu0  ;;  %v901_v52 = vpop.f32.mrb[3].mxu1  ;;  %v3083_v60 = vld [vmem:[%s4280_s6 + $0x48] sm:$0xff]  ;;  %v3088_v25 = vld [vmem:[%s4280_s6 + $0x58] sm:$0xff] }
 0x2f7   :  { %v735_v38 = vadd.f32 %v734_v62, %v3016_v45  ;;  %v902_v23 = vadd.f32 %v901_v52, %v3021_v55 }
 0x2f8   :  { %1000 = vst [vmem:[%s4281_s7] sm:$0xff] %v733_v26  ;;  %1002 = vst [vmem:[%s4281_s7 + $0x10] sm:$0xff] %v900_v50 }
 0x2f9   :  { %1001 = vst [vmem:[%s4281_s7 + $0x8] sm:$0xff] %v735_v38  ;;  %1004 = vst.msk [vmem:[%s4281_s7 + $0x18] sm:$0xff] %vm1003_vm4, %v902_v23  ;;  %v738_v10 = vpop.f32.mrb[4].mxu0  ;;  %v905_v27 = vpop.f32.mrb[4].mxu1 }
 0x2fa   :  { %v739_v12 = vadd.f32 %v738_v10, %v3030_v13  ;;  %v906_v54 = vadd.f32 %v905_v27, %v3035_v17  ;;  %v740_v29 = vpop.f32.mrb[5].mxu0  ;;  %v907_v2 = vpop.f32.mrb[5].mxu1 }
 0x2fb   :  { %v741_v30 = vadd.f32 %v740_v29, %v3046_v59  ;;  %v908_v46 = vadd.f32 %v907_v2, %v3051_v37  ;;  %v3120_v29 = vld [vmem:[%s4280_s6 + $0x68] sm:$0xff]  ;;  %v3125_v2 = vld [vmem:[%s4280_s6 + $0x78] sm:$0xff] }
 0x2fc   :  { %1005 = vst [vmem:[%s4281_s7 + $0x20] sm:$0xff] %v739_v12  ;;  %1007 = vst [vmem:[%s4281_s7 + $0x30] sm:$0xff] %v906_v54  ;;  %v3104_v12 = vld [vmem:[%s4280_s6 + $0x60] sm:$0xff]  ;;  %v3109_v54 = vld [vmem:[%s4280_s6 + $0x70] sm:$0xff] }
 0x2fd   :  { %1006 = vst [vmem:[%s4281_s7 + $0x28] sm:$0xff] %v741_v30  ;;  %1008 = vst.msk [vmem:[%s4281_s7 + $0x38] sm:$0xff] %vm1003_vm4, %v908_v46  ;;  %v744_v26 = vpop.f32.mrb[6].mxu0  ;;  %v911_v50 = vpop.f32.mrb[6].mxu1 }
 0x2fe   :  { %v745_v62 = vadd.f32 %v744_v26, %v3067_v1  ;;  %v912_v52 = vadd.f32 %v911_v50, %v3072_v51  ;;  %v746_v38 = vpop.f32.mrb[7].mxu0  ;;  %v913_v23 = vpop.f32.mrb[7].mxu1  ;;  %4337 = vst [vmem:[#allocation2_spill] sm:$0xff] %v3104_v12  ;;  %4338 = vst [vmem:[#allocation3_spill] sm:$0xff] %v3109_v54 }
 0x2ff   :  { %v747_v10 = vadd.f32 %v746_v38, %v3083_v60  ;;  %v914_v27 = vadd.f32 %v913_v23, %v3088_v25  ;;  %4339 = vst [vmem:[#allocation4_spill] sm:$0xff] %v3120_v29  ;;  %4340 = vst [vmem:[#allocation5_spill] sm:$0xff] %v3125_v2 }
 0x300   :  { %1009 = vst [vmem:[%s4281_s7 + $0x40] sm:$0xff] %v745_v62  ;;  %1011 = vst [vmem:[%s4281_s7 + $0x50] sm:$0xff] %v912_v52 }
 0x301   :  { %1010 = vst [vmem:[%s4281_s7 + $0x48] sm:$0xff] %v747_v10  ;;  %1012 = vst.msk [vmem:[%s4281_s7 + $0x58] sm:$0xff] %vm1003_vm4, %v914_v27  ;;  %v750_v30 = vpop.f32.mrb[8].mxu0  ;;  %v917_v46 = vpop.f32.mrb[8].mxu1  ;;  %v3141_v10 = vld [vmem:[%s4280_s6 + $0x80] sm:$0xff]  ;;  %v3146_v27 = vld [vmem:[%s4280_s6 + $0x90] sm:$0xff] }
 0x302   :  { %v751_v26 = vadd.f32 %v750_v30, %v3104_v12  ;;  %v918_v50 = vadd.f32 %v917_v46, %v3109_v54  ;;  %v752_v62 = vpop.f32.mrb[9].mxu0  ;;  %v919_v52 = vpop.f32.mrb[9].mxu1  ;;  %4341 = vst [vmem:[#allocation6_spill] sm:$0xff] %v3141_v10  ;;  %4342 = vst [vmem:[#allocation7_spill] sm:$0xff] %v3146_v27  ;;  %v3157_v30 = vld [vmem:[%s4280_s6 + $0x88] sm:$0xff]  ;;  %v3162_v46 = vld [vmem:[%s4280_s6 + $0x98] sm:$0xff] }
 0x303   :  { %v753_v38 = vadd.f32 %v752_v62, %v3120_v29  ;;  %v920_v23 = vadd.f32 %v919_v52, %v3125_v2  ;;  %4343 = vst [vmem:[#allocation8_spill] sm:$0xff] %v3157_v30  ;;  %4344 = vst [vmem:[#allocation9_spill] sm:$0xff] %v3162_v46 }
 0x304   :  { %1013 = vst [vmem:[%s4281_s7 + $0x60] sm:$0xff] %v751_v26  ;;  %1015 = vst [vmem:[%s4281_s7 + $0x70] sm:$0xff] %v918_v50 }
 0x305   :  { %1014 = vst [vmem:[%s4281_s7 + $0x68] sm:$0xff] %v753_v38  ;;  %1016 = vst.msk [vmem:[%s4281_s7 + $0x78] sm:$0xff] %vm1003_vm4, %v920_v23  ;;  %v756_v26 = vpop.f32.mrb[10].mxu0  ;;  %v923_v50 = vpop.f32.mrb[10].mxu1  ;;  %v3178_v38 = vld [vmem:[%s4280_s6 + $0xa0] sm:$0xff]  ;;  %v3183_v23 = vld [vmem:[%s4280_s6 + $0xb0] sm:$0xff] }
 0x306   :  { %v757_v62 = vadd.f32 %v756_v26, %v3141_v10  ;;  %v924_v52 = vadd.f32 %v923_v50, %v3146_v27  ;;  %v758_v2 = vpop.f32.mrb[11].mxu0  ;;  %v925_v29 = vpop.f32.mrb[11].mxu1  ;;  %4345 = vst [vmem:[#allocation10_spill] sm:$0xff] %v3178_v38  ;;  %4346 = vst [vmem:[#allocation11_spill] sm:$0xff] %v3183_v23 }
 0x307   :  { %v759_v54 = vadd.f32 %v758_v2, %v3157_v30  ;;  %v926_v12 = vadd.f32 %v925_v29, %v3162_v46  ;;  %v3194_v29 = vld [vmem:[%s4280_s6 + $0xa8] sm:$0xff]  ;;  %v3199_v2 = vld [vmem:[%s4280_s6 + $0xb8] sm:$0xff] }
 0x308   :  { %1017 = vst [vmem:[%s4281_s7 + $0x80] sm:$0xff] %v757_v62  ;;  %1019 = vst [vmem:[%s4281_s7 + $0x90] sm:$0xff] %v924_v52 }
 0x309   :  { %4347 = vst [vmem:[#allocation12_spill] sm:$0xff] %v3194_v29  ;;  %4348 = vst [vmem:[#allocation13_spill] sm:$0xff] %v3199_v2  ;;  %v762_v26 = vpop.f32.mrb[12].mxu0  ;;  %v929_v50 = vpop.f32.mrb[12].mxu1 }
 0x30a   :  { %1018 = vst [vmem:[%s4281_s7 + $0x88] sm:$0xff] %v759_v54  ;;  %1020 = vst.msk [vmem:[%s4281_s7 + $0x98] sm:$0xff] %vm1003_vm4, %v926_v12  ;;  %v763_v62 = vadd.f32 %v762_v26, %v3178_v38  ;;  %v930_v52 = vadd.f32 %v929_v50, %v3183_v23  ;;  %v764_v46 = vpop.f32.mrb[13].mxu0  ;;  %v931_v30 = vpop.f32.mrb[13].mxu1  ;;  %v3215_v54 = vld [vmem:[%s4280_s6 + $0xc0] sm:$0xff]  ;;  %v3220_v12 = vld [vmem:[%s4280_s6 + $0xd0] sm:$0xff] }
 0x30b   :  { %v765_v27 = vadd.f32 %v764_v46, %v3194_v29  ;;  %v932_v10 = vadd.f32 %v931_v30, %v3199_v2  ;;  %4349 = vst [vmem:[#allocation14_spill] sm:$0xff] %v3215_v54  ;;  %4350 = vst [vmem:[#allocation15_spill] sm:$0xff] %v3220_v12  ;;  %v3231_v30 = vld [vmem:[%s4280_s6 + $0xc8] sm:$0xff]  ;;  %v3236_v46 = vld [vmem:[%s4280_s6 + $0xd8] sm:$0xff] }
 0x30c   :  { %1021 = vst [vmem:[%s4281_s7 + $0xa0] sm:$0xff] %v763_v62  ;;  %1023 = vst [vmem:[%s4281_s7 + $0xb0] sm:$0xff] %v930_v52 }
 0x30d   :  { %4351 = vst [vmem:[#allocation16_spill] sm:$0xff] %v3231_v30  ;;  %4352 = vst [vmem:[#allocation17_spill] sm:$0xff] %v3236_v46  ;;  %v768_v26 = vpop.f32.mrb[14].mxu0  ;;  %v935_v50 = vpop.f32.mrb[14].mxu1 }
 0x30e   :  { %1022 = vst [vmem:[%s4281_s7 + $0xa8] sm:$0xff] %v765_v27  ;;  %1024 = vst.msk [vmem:[%s4281_s7 + $0xb8] sm:$0xff] %vm1003_vm4, %v932_v10  ;;  %v769_v62 = vadd.f32 %v768_v26, %v3215_v54  ;;  %v936_v52 = vadd.f32 %v935_v50, %v3220_v12  ;;  %v770_v2 = vpop.f32.mrb[15].mxu0  ;;  %v937_v29 = vpop.f32.mrb[15].mxu1  ;;  %v3252_v27 = vld [vmem:[%s4280_s6 + $0xe0] sm:$0xff]  ;;  %v3257_v10 = vld [vmem:[%s4280_s6 + $0xf0] sm:$0xff] }
 0x30f   :  { %v771_v23 = vadd.f32 %v770_v2, %v3231_v30  ;;  %v938_v38 = vadd.f32 %v937_v29, %v3236_v46  ;;  %4353 = vst [vmem:[#allocation18_spill] sm:$0xff] %v3252_v27  ;;  %4354 = vst [vmem:[#allocation19_spill] sm:$0xff] %v3257_v10  ;;  %v3268_v29 = vld [vmem:[%s4280_s6 + $0xe8] sm:$0xff]  ;;  %v3273_v2 = vld [vmem:[%s4280_s6 + $0xf8] sm:$0xff] }
 0x310   :  { %1025 = vst [vmem:[%s4281_s7 + $0xc0] sm:$0xff] %v769_v62  ;;  %1027 = vst [vmem:[%s4281_s7 + $0xd0] sm:$0xff] %v936_v52 }
 0x311   :  { %4355 = vst [vmem:[#allocation20_spill] sm:$0xff] %v3268_v29  ;;  %4356 = vst [vmem:[#allocation21_spill] sm:$0xff] %v3273_v2  ;;  %v774_v26 = vpop.f32.mrb[16].mxu0  ;;  %v941_v50 = vpop.f32.mrb[16].mxu1 }
 0x312   :  { %1026 = vst [vmem:[%s4281_s7 + $0xc8] sm:$0xff] %v771_v23  ;;  %1028 = vst.msk [vmem:[%s4281_s7 + $0xd8] sm:$0xff] %vm1003_vm4, %v938_v38  ;;  %v775_v62 = vadd.f32 %v774_v26, %v3252_v27  ;;  %v942_v52 = vadd.f32 %v941_v50, %v3257_v10  ;;  %v776_v46 = vpop.f32.mrb[17].mxu0  ;;  %v943_v30 = vpop.f32.mrb[17].mxu1  ;;  %v3289_v23 = vld [vmem:[%s4280_s6 + $0x100] sm:$0xff]  ;;  %v3294_v38 = vld [vmem:[%s4280_s6 + $0x110] sm:$0xff] }
 0x313   :  { %v777_v12 = vadd.f32 %v776_v46, %v3268_v29  ;;  %v944_v54 = vadd.f32 %v943_v30, %v3273_v2  ;;  %4357 = vst [vmem:[#allocation22_spill] sm:$0xff] %v3289_v23  ;;  %4358 = vst [vmem:[#allocation23_spill] sm:$0xff] %v3294_v38  ;;  %v3305_v30 = vld [vmem:[%s4280_s6 + $0x108] sm:$0xff]  ;;  %v3310_v46 = vld [vmem:[%s4280_s6 + $0x118] sm:$0xff] }
 0x314   :  { %1029 = vst [vmem:[%s4281_s7 + $0xe0] sm:$0xff] %v775_v62  ;;  %1031 = vst [vmem:[%s4281_s7 + $0xf0] sm:$0xff] %v942_v52 }
 0x315   :  { %4359 = vst [vmem:[#allocation24_spill] sm:$0xff] %v3305_v30  ;;  %4360 = vst [vmem:[#allocation25_spill] sm:$0xff] %v3310_v46  ;;  %v780_v26 = vpop.f32.mrb[18].mxu0  ;;  %v947_v50 = vpop.f32.mrb[18].mxu1 }
 0x316   :  { %1030 = vst [vmem:[%s4281_s7 + $0xe8] sm:$0xff] %v777_v12  ;;  %1032 = vst.msk [vmem:[%s4281_s7 + $0xf8] sm:$0xff] %vm1003_vm4, %v944_v54  ;;  %v781_v62 = vadd.f32 %v780_v26, %v3289_v23  ;;  %v948_v52 = vadd.f32 %v947_v50, %v3294_v38  ;;  %v782_v2 = vpop.f32.mrb[19].mxu0  ;;  %v949_v29 = vpop.f32.mrb[19].mxu1  ;;  %v3326_v12 = vld [vmem:[%s4280_s6 + $0x120] sm:$0xff]  ;;  %v3331_v54 = vld [vmem:[%s4280_s6 + $0x130] sm:$0xff] }
 0x317   :  { %v783_v10 = vadd.f32 %v782_v2, %v3305_v30  ;;  %v950_v27 = vadd.f32 %v949_v29, %v3310_v46  ;;  %4361 = vst [vmem:[#allocation26_spill] sm:$0xff] %v3326_v12  ;;  %4362 = vst [vmem:[#allocation27_spill] sm:$0xff] %v3331_v54  ;;  %v3342_v29 = vld [vmem:[%s4280_s6 + $0x128] sm:$0xff]  ;;  %v3347_v2 = vld [vmem:[%s4280_s6 + $0x138] sm:$0xff] }
 0x318   :  { %1033 = vst [vmem:[%s4281_s7 + $0x100] sm:$0xff] %v781_v62  ;;  %1035 = vst [vmem:[%s4281_s7 + $0x110] sm:$0xff] %v948_v52 }
 0x319   :  { %4363 = vst [vmem:[#allocation28_spill] sm:$0xff] %v3342_v29  ;;  %4364 = vst [vmem:[#allocation29_spill] sm:$0xff] %v3347_v2  ;;  %v786_v26 = vpop.f32.mrb[20].mxu0  ;;  %v953_v50 = vpop.f32.mrb[20].mxu1 }
 0x31a   :  { %1034 = vst [vmem:[%s4281_s7 + $0x108] sm:$0xff] %v783_v10  ;;  %1036 = vst.msk [vmem:[%s4281_s7 + $0x118] sm:$0xff] %vm1003_vm4, %v950_v27  ;;  %v787_v62 = vadd.f32 %v786_v26, %v3326_v12  ;;  %v954_v52 = vadd.f32 %v953_v50, %v3331_v54  ;;  %v788_v46 = vpop.f32.mrb[21].mxu0  ;;  %v955_v30 = vpop.f32.mrb[21].mxu1  ;;  %v3363_v10 = vld [vmem:[%s4280_s6 + $0x140] sm:$0xff]  ;;  %v3368_v27 = vld [vmem:[%s4280_s6 + $0x150] sm:$0xff] }
 0x31b   :  { %v789_v38 = vadd.f32 %v788_v46, %v3342_v29  ;;  %v956_v23 = vadd.f32 %v955_v30, %v3347_v2  ;;  %4365 = vst [vmem:[#allocation30_spill] sm:$0xff] %v3363_v10  ;;  %4366 = vst [vmem:[#allocation31_spill] sm:$0xff] %v3368_v27  ;;  %v3379_v30 = vld [vmem:[%s4280_s6 + $0x148] sm:$0xff]  ;;  %v3384_v46 = vld [vmem:[%s4280_s6 + $0x158] sm:$0xff] }
 0x31c   :  { %1037 = vst [vmem:[%s4281_s7 + $0x120] sm:$0xff] %v787_v62  ;;  %1039 = vst [vmem:[%s4281_s7 + $0x130] sm:$0xff] %v954_v52 }
 0x31d   :  { %4367 = vst [vmem:[#allocation32_spill] sm:$0xff] %v3379_v30  ;;  %4368 = vst [vmem:[#allocation33_spill] sm:$0xff] %v3384_v46  ;;  %v792_v26 = vpop.f32.mrb[22].mxu0  ;;  %v959_v50 = vpop.f32.mrb[22].mxu1 }
 0x31e   :  { %1038 = vst [vmem:[%s4281_s7 + $0x128] sm:$0xff] %v789_v38  ;;  %1040 = vst.msk [vmem:[%s4281_s7 + $0x138] sm:$0xff] %vm1003_vm4, %v956_v23  ;;  %v793_v62 = vadd.f32 %v792_v26, %v3363_v10  ;;  %v960_v52 = vadd.f32 %v959_v50, %v3368_v27  ;;  %v794_v2 = vpop.f32.mrb[23].mxu0  ;;  %v961_v29 = vpop.f32.mrb[23].mxu1  ;;  %v3400_v38 = vld [vmem:[%s4280_s6 + $0x160] sm:$0xff]  ;;  %v3405_v23 = vld [vmem:[%s4280_s6 + $0x170] sm:$0xff] }
 0x31f   :  { %v795_v54 = vadd.f32 %v794_v2, %v3379_v30  ;;  %v962_v12 = vadd.f32 %v961_v29, %v3384_v46  ;;  %4369 = vst [vmem:[#allocation34_spill] sm:$0xff] %v3400_v38  ;;  %4370 = vst [vmem:[#allocation35_spill] sm:$0xff] %v3405_v23  ;;  %v3416_v29 = vld [vmem:[%s4280_s6 + $0x168] sm:$0xff]  ;;  %v3421_v2 = vld [vmem:[%s4280_s6 + $0x178] sm:$0xff] }
 0x320   :  { %1041 = vst [vmem:[%s4281_s7 + $0x140] sm:$0xff] %v793_v62  ;;  %1043 = vst [vmem:[%s4281_s7 + $0x150] sm:$0xff] %v960_v52 }
 0x321   :  { %4371 = vst [vmem:[#allocation36_spill] sm:$0xff] %v3416_v29  ;;  %4372 = vst [vmem:[#allocation37_spill] sm:$0xff] %v3421_v2  ;;  %v798_v26 = vpop.f32.mrb[24].mxu0  ;;  %v965_v50 = vpop.f32.mrb[24].mxu1 }
 0x322   :  { %1042 = vst [vmem:[%s4281_s7 + $0x148] sm:$0xff] %v795_v54  ;;  %1044 = vst.msk [vmem:[%s4281_s7 + $0x158] sm:$0xff] %vm1003_vm4, %v962_v12  ;;  %v799_v62 = vadd.f32 %v798_v26, %v3400_v38  ;;  %v966_v52 = vadd.f32 %v965_v50, %v3405_v23  ;;  %v800_v46 = vpop.f32.mrb[25].mxu0  ;;  %v967_v30 = vpop.f32.mrb[25].mxu1  ;;  %v3437_v54 = vld [vmem:[%s4280_s6 + $0x180] sm:$0xff]  ;;  %v3442_v12 = vld [vmem:[%s4280_s6 + $0x190] sm:$0xff] }
 0x323   :  { %v801_v27 = vadd.f32 %v800_v46, %v3416_v29  ;;  %v968_v10 = vadd.f32 %v967_v30, %v3421_v2  ;;  %4373 = vst [vmem:[#allocation38_spill] sm:$0xff] %v3437_v54  ;;  %4374 = vst [vmem:[#allocation39_spill] sm:$0xff] %v3442_v12  ;;  %v3453_v30 = vld [vmem:[%s4280_s6 + $0x188] sm:$0xff]  ;;  %v3458_v46 = vld [vmem:[%s4280_s6 + $0x198] sm:$0xff] }
 0x324   :  { %1045 = vst [vmem:[%s4281_s7 + $0x160] sm:$0xff] %v799_v62  ;;  %1047 = vst [vmem:[%s4281_s7 + $0x170] sm:$0xff] %v966_v52 }
 0x325   :  { %4375 = vst [vmem:[#allocation40_spill] sm:$0xff] %v3453_v30  ;;  %4376 = vst [vmem:[#allocation41_spill] sm:$0xff] %v3458_v46  ;;  %v804_v26 = vpop.f32.mrb[26].mxu0  ;;  %v971_v50 = vpop.f32.mrb[26].mxu1 }
 0x326   :  { %1046 = vst [vmem:[%s4281_s7 + $0x168] sm:$0xff] %v801_v27  ;;  %1048 = vst.msk [vmem:[%s4281_s7 + $0x178] sm:$0xff] %vm1003_vm4, %v968_v10  ;;  %v805_v62 = vadd.f32 %v804_v26, %v3437_v54  ;;  %v972_v52 = vadd.f32 %v971_v50, %v3442_v12  ;;  %v806_v2 = vpop.f32.mrb[27].mxu0  ;;  %v973_v29 = vpop.f32.mrb[27].mxu1  ;;  %v3474_v27 = vld [vmem:[%s4280_s6 + $0x1a0] sm:$0xff]  ;;  %v3479_v10 = vld [vmem:[%s4280_s6 + $0x1b0] sm:$0xff] }
 0x327   :  { %v807_v23 = vadd.f32 %v806_v2, %v3453_v30  ;;  %v974_v38 = vadd.f32 %v973_v29, %v3458_v46  ;;  %4377 = vst [vmem:[#allocation42_spill] sm:$0xff] %v3474_v27  ;;  %4378 = vst [vmem:[#allocation43_spill] sm:$0xff] %v3479_v10  ;;  %v3490_v29 = vld [vmem:[%s4280_s6 + $0x1a8] sm:$0xff]  ;;  %v3495_v2 = vld [vmem:[%s4280_s6 + $0x1b8] sm:$0xff] }
 0x328   :  { %1049 = vst [vmem:[%s4281_s7 + $0x180] sm:$0xff] %v805_v62  ;;  %1051 = vst [vmem:[%s4281_s7 + $0x190] sm:$0xff] %v972_v52 }
 0x329   :  { %4379 = vst [vmem:[#allocation44_spill] sm:$0xff] %v3490_v29  ;;  %4380 = vst [vmem:[#allocation45_spill] sm:$0xff] %v3495_v2  ;;  %v810_v26 = vpop.f32.mrb[28].mxu0  ;;  %v977_v50 = vpop.f32.mrb[28].mxu1 }
 0x32a   :  { %1050 = vst [vmem:[%s4281_s7 + $0x188] sm:$0xff] %v807_v23  ;;  %1052 = vst.msk [vmem:[%s4281_s7 + $0x198] sm:$0xff] %vm1003_vm4, %v974_v38  ;;  %v811_v62 = vadd.f32 %v810_v26, %v3474_v27  ;;  %v978_v52 = vadd.f32 %v977_v50, %v3479_v10  ;;  %v812_v46 = vpop.f32.mrb[29].mxu0  ;;  %v979_v30 = vpop.f32.mrb[29].mxu1  ;;  %v3511_v23 = vld [vmem:[%s4280_s6 + $0x1c0] sm:$0xff]  ;;  %v3516_v38 = vld [vmem:[%s4280_s6 + $0x1d0] sm:$0xff] }
 0x32b   :  { %v813_v12 = vadd.f32 %v812_v46, %v3490_v29  ;;  %v980_v54 = vadd.f32 %v979_v30, %v3495_v2  ;;  %4381 = vst [vmem:[#allocation46_spill] sm:$0xff] %v3511_v23  ;;  %4382 = vst [vmem:[#allocation47_spill] sm:$0xff] %v3516_v38  ;;  %v3527_v30 = vld [vmem:[%s4280_s6 + $0x1c8] sm:$0xff]  ;;  %v3532_v46 = vld [vmem:[%s4280_s6 + $0x1d8] sm:$0xff] }
 0x32c   :  { %1053 = vst [vmem:[%s4281_s7 + $0x1a0] sm:$0xff] %v811_v62  ;;  %1055 = vst [vmem:[%s4281_s7 + $0x1b0] sm:$0xff] %v978_v52 }
 0x32d   :  { %4383 = vst [vmem:[#allocation48_spill] sm:$0xff] %v3527_v30  ;;  %4384 = vst [vmem:[#allocation49_spill] sm:$0xff] %v3532_v46  ;;  %v816_v26 = vpop.f32.mrb[30].mxu0  ;;  %v983_v50 = vpop.f32.mrb[30].mxu1 }
 0x32e   :  { %1054 = vst [vmem:[%s4281_s7 + $0x1a8] sm:$0xff] %v813_v12  ;;  %1056 = vst.msk [vmem:[%s4281_s7 + $0x1b8] sm:$0xff] %vm1003_vm4, %v980_v54  ;;  %v817_v62 = vadd.f32 %v816_v26, %v3511_v23  ;;  %v984_v52 = vadd.f32 %v983_v50, %v3516_v38  ;;  %v818_v2 = vpop.f32.mrb[31].mxu0  ;;  %v985_v29 = vpop.f32.mrb[31].mxu1  ;;  %v3548_v12 = vld [vmem:[%s4280_s6 + $0x1e0] sm:$0xff]  ;;  %v3553_v54 = vld [vmem:[%s4280_s6 + $0x1f0] sm:$0xff] }
 0x32f   :  { %v819_v10 = vadd.f32 %v818_v2, %v3527_v30  ;;  %v986_v27 = vadd.f32 %v985_v29, %v3532_v46  ;;  %4385 = vst [vmem:[#allocation50_spill] sm:$0xff] %v3548_v12  ;;  %4386 = vst [vmem:[#allocation51_spill] sm:$0xff] %v3553_v54  ;;  %v3564_v29 = vld [vmem:[%s4280_s6 + $0x1e8] sm:$0xff]  ;;  %v3569_v2 = vld [vmem:[%s4280_s6 + $0x1f8] sm:$0xff] }
 0x330   :  { %1057 = vst [vmem:[%s4281_s7 + $0x1c0] sm:$0xff] %v817_v62  ;;  %1059 = vst [vmem:[%s4281_s7 + $0x1d0] sm:$0xff] %v984_v52 }
 0x331   :  { %4387 = vst [vmem:[#allocation52_spill] sm:$0xff] %v3564_v29  ;;  %4388 = vst [vmem:[#allocation53_spill] sm:$0xff] %v3569_v2  ;;  %v822_v26 = vpop.f32.mrb[32].mxu0  ;;  %v989_v50 = vpop.f32.mrb[32].mxu1 }
 0x332   :  { %1058 = vst [vmem:[%s4281_s7 + $0x1c8] sm:$0xff] %v819_v10  ;;  %1060 = vst.msk [vmem:[%s4281_s7 + $0x1d8] sm:$0xff] %vm1003_vm4, %v986_v27  ;;  %v823_v62 = vadd.f32 %v822_v26, %v3548_v12  ;;  %v990_v52 = vadd.f32 %v989_v50, %v3553_v54  ;;  %v824_v46 = vpop.f32.mrb[33].mxu0  ;;  %v991_v30 = vpop.f32.mrb[33].mxu1  ;;  %v3585_v10 = vld [vmem:[%s4280_s6 + $0x200] sm:$0x1f] }
 0x333   :  { %v825_v38 = vadd.f32 %v824_v46, %v3564_v29  ;;  %v992_v23 = vadd.f32 %v991_v30, %v3569_v2  ;;  %v3590_v27 = vld [vmem:[%s4280_s6 + $0x210] sm:$0x1f]  ;;  %v3601_v30 = vld [vmem:[%s4280_s6 + $0x208] sm:$0x1f]  ;;  %v3606_v46 = vld [vmem:[%s4280_s6 + $0x218] sm:$0x1f] }
 0x334   :  { %1061 = vst [vmem:[%s4281_s7 + $0x1e0] sm:$0xff] %v823_v62  ;;  %1063 = vst [vmem:[%s4281_s7 + $0x1f0] sm:$0xff] %v990_v52 }
 0x335   :  { %1062 = vst [vmem:[%s4281_s7 + $0x1e8] sm:$0xff] %v825_v38  ;;  %1064 = vst.msk [vmem:[%s4281_s7 + $0x1f8] sm:$0xff] %vm1003_vm4, %v992_v23  ;;  %v828_v26 = vpop.f32.mrb[34].mxu0  ;;  %v995_v50 = vpop.f32.mrb[34].mxu1 }
 0x336   :  { %v829_v62 = vadd.f32 %v828_v26, %v3585_v10  ;;  %v996_v52 = vadd.f32 %v995_v50, %v3590_v27  ;;  %v830_v2 = vpop.f32.mrb[35].mxu0  ;;  %v997_v29 = vpop.f32.mrb[35].mxu1 }
 0x337   :  { %v831_v54 = vadd.f32 %v830_v2, %v3601_v30  ;;  %v998_v12 = vadd.f32 %v997_v29, %v3606_v46 }
 0x338   :  { %1065 = vst [vmem:[%s4281_s7 + $0x200] sm:$0x1f] %v829_v62  ;;  %1067 = vst [vmem:[%s4281_s7 + $0x210] sm:$0x1f] %v996_v52 }
 0x339   :  { %1066 = vst [vmem:[%s4281_s7 + $0x208] sm:$0x1f] %v831_v54  ;;  %1069 = vst.msk [vmem:[%s4281_s7 + $0x218] sm:$0x1f] %vm1068_vm5, %v998_v12  ;;  %v1196_v23 = vpop.f32.mrb[36].mxu0 }
 0x33a   :  { %v3633_v38 = vrot.slane %v1196_v23, %v2426_v36  ;;  %v2092_v29 = vpop.f32.mrb[37].mxu0 }
 0x33c   :  { %v1204_v2 = vsub.f32 %v2658_v63, %v3633_v38  ;;  %v1205_v26 = vsub.f32 %v2663_v20, %v3633_v38  ;;  %v1206_v50 = vsub.f32 %v2672_v0, %v3633_v38  ;;  %v1207_v12 = vsub.f32 %v2679_v57, %v3633_v38 }
 0x33d   :  { %v1208_v52 = vsub.f32 %v2686_v32, %v3633_v38  ;;  %v1209_v0 = vsub.f32 %v2693_v41, %v3633_v38  ;;  %v1211_v41 = vsub.f32 %v2725_v5, %v3633_v38 }
 0x33e   :  { %v3642_v54 = vmul.f32 %v1204_v2, %v2418_v28  ;;  %v3647_v62 = vmul.f32 %v1205_v26, %v2422_v34  ;;  %v3652_v63 = vmul.f32 %v1206_v50, %v2420_v31  ;;  %v3659_v28 = vmul.f32 %v1207_v12, %v2424_v35 }
 0x33f   :  { %v1210_v34 = vsub.f32 %v2710_v16, %v3633_v38  ;;  %v3666_v32 = vmul.f32 %v1208_v52, %v2428_v39  ;;  %v3674_v35 = vmul.f32 %v1209_v0, %v2433_v43  ;;  %v1212_v39 = vsub.f32 %v2746_v21, %v3633_v38 }
 0x340   :  { %v1238_v20 = vmul.f32 %v3642_v54, %v3642_v54  ;;  %v1239_v57 = vmul.f32 %v3647_v62, %v3647_v62  ;;  %v1240_v31 = vmul.f32 %v3652_v63, %v3652_v63  ;;  %v1241_v29 = vmul.f32 %v3659_v28, %v3659_v28 }
 0x341   :  { %v3682_v26 = vmul.f32 %v1210_v34, %v2441_v48  ;;  %v1242_v50 = vmul.f32 %v3666_v32, %v3666_v32  ;;  %v1213_v43 = vsub.f32 %v2768_v4, %v3633_v38  ;;  %v3690_v52 = vmul.f32 %v1211_v41, %v2451_v53 }
 0x342   :  { %v1255_v23 = vsel %vm177_vm1, %v1238_v20, 0.0  ;;  %v1256_v2 = vsel %vm177_vm1, %v1239_v57, 0.0  ;;  %v1258_v5 = vsel %vm177_vm1, %v1240_v31, 0.0  ;;  %v1243_v20 = vmul.f32 %v3674_v35, %v3674_v35 }
 0x343   :  { %v1257_v16 = vadd.f32 %v1256_v2, %v1255_v23  ;;  %v1260_v21 = vsel %vm177_vm1, %v1241_v29, 0.0  ;;  %v1214_v48 = vsub.f32 %v2791_v15, %v3633_v38  ;;  %v3698_v57 = vmul.f32 %v1212_v39, %v2467_v58 }
 0x344   :  { %v1244_v34 = vmul.f32 %v3682_v26, %v3682_v26  ;;  %v1262_v4 = vsel %vm177_vm1, %v1242_v50, 0.0  ;;  %v1215_v53 = vsub.f32 %v2811_v56, %v3633_v38  ;;  %v3706_v23 = vmul.f32 %v1213_v43, %v2476_v61 }
 0x345   :  { %v1259_v12 = vadd.f32 %v1258_v5, %v1257_v16  ;;  %v1245_v41 = vmul.f32 %v3690_v52, %v3690_v52  ;;  %v1264_v15 = vsel %vm177_vm1, %v1243_v20, 0.0  ;;  %v1216_v58 = vsub.f32 %v2830_v49, %v3633_v38 }
 0x346   :  { %v3714_v2 = vmul.f32 %v1214_v48, %v2495_v14  ;;  %v1246_v16 = vmul.f32 %v3698_v57, %v3698_v57  ;;  %v1266_v56 = vsel %vm177_vm1, %v1244_v34, 0.0  ;;  %v1217_v61 = vsub.f32 %v2849_v47, %v3633_v38 }
 0x347   :  { %v1261_v0 = vadd.f32 %v1260_v21, %v1259_v12  ;;  %v3722_v50 = vmul.f32 %v1215_v53, %v2505_v22  ;;  %v1247_v5 = vmul.f32 %v3706_v23, %v3706_v23  ;;  %v1268_v49 = vsel %vm177_vm1, %v1245_v41, 0.0 }
 0x348   :  { %v1218_v14 = vsub.f32 %v2868_v11, %v3633_v38  ;;  %v3730_v43 = vmul.f32 %v1216_v58, %v2523_v44  ;;  %v1248_v20 = vmul.f32 %v3714_v2, %v3714_v2  ;;  %v1270_v47 = vsel %vm177_vm1, %v1246_v16, 0.0 }
 0x349   :  { %v1263_v31 = vadd.f32 %v1262_v4, %v1261_v0  ;;  %v1219_v22 = vsub.f32 %v2887_v19, %v3633_v38  ;;  %v3738_v0 = vmul.f32 %v1217_v61, %v2533_v7  ;;  %v1249_v48 = vmul.f32 %v3722_v50, %v3722_v50 }
 0x34a   :  { %v1272_v11 = vsel %vm177_vm1, %v1247_v5, 0.0  ;;  %v1220_v44 = vsub.f32 %v2904_v24, %v3633_v38  ;;  %v3746_v4 = vmul.f32 %v1218_v14, %v2551_v9  ;;  %v1274_v19 = vsel %vm177_vm1, %v1248_v20, 0.0 }
 0x34b   :  { %v1265_v29 = vadd.f32 %v1264_v15, %v1263_v31  ;;  %v1250_v31 = vmul.f32 %v3730_v43, %v3730_v43  ;;  %v3752_v7 = vmul.f32 %v1219_v22, %v2561_v18  ;;  %v1251_v41 = vmul.f32 %v3738_v0, %v3738_v0 }
 0x34c   :  { %v1276_v15 = vsel %vm177_vm1, %v1249_v48, 0.0  ;;  %v3758_v24 = vmul.f32 %v1220_v44, %v2577_v42  ;;  %v1252_v9 = vmul.f32 %v3746_v4, %v3746_v4  ;;  %v2141_v44 = vld [vmem:[%s4277_s5 + $0x50] sm:$0x3] }
 0x34d   :  { %v1267_v39 = vadd.f32 %v1266_v56, %v1265_v29  ;;  %v1278_v38 = vsel %vm177_vm1, %v1250_v31, 0.0  ;;  %v1253_v16 = vmul.f32 %v3752_v7, %v3752_v7  ;;  %v1280_v18 = vsel %vm177_vm1, %v1251_v41, 0.0 }
 0x34e   :  { %v1282_v61 = vsel %vm177_vm1, %v1252_v9, 0.0  ;;  %v2142_v9 = vld [vmem:[%s4278_s3] sm:$0xff] }
 0x34f   :  { %v1269_v12 = vadd.f32 %v1268_v49, %v1267_v39  ;;  %v1254_v39 = vmul.f32 %v3758_v24, %v3758_v24  ;;  %v1284_v42 = vsel %vm177_vm1, %v1253_v16, 0.0 }
 0x351   :  { %v1271_v21 = vadd.f32 %v1270_v47, %v1269_v12  ;;  %v1286_v12 = vsel %vm209_vm3, %v1254_v39, 0.0  ;;  %v2146_v39 = vld [vmem:[%s4278_s3 + $0x10] sm:$0xff] }
 0x353   :  { %v1273_v34 = vadd.f32 %v1272_v11, %v1271_v21 }
 0x355   :  { %v1275_v53 = vadd.f32 %v1274_v19, %v1273_v34  ;;  %v2140_v34 = vld [vmem:[%s4277_s5 + $0x58] sm:$0x3] }
 0x357   :  { %v1277_v29 = vadd.f32 %v1276_v15, %v1275_v53 }
 0x359   :  { %v1279_v58 = vadd.f32 %v1278_v38, %v1277_v29 }
 0x35b   :  { %v1281_v56 = vadd.f32 %v1280_v18, %v1279_v58  ;;  %v2143_v58 = vld [vmem:[%s4279_s4] sm:$0xff] }
 0x35d   :  { %v1283_v5 = vadd.f32 %v1282_v61, %v1281_v56 }
 0x35f   :  { %v1285_v49 = vadd.f32 %v1284_v42, %v1283_v5  ;;  %v2147_v5 = vld [vmem:[%s4279_s4 + $0x10] sm:$0xff] }
 0x361   :  { %v1287_v14 = vadd.f32 %v1286_v12, %v1285_v49  ;;  %v2148_v49 = vld [vmem:[%s4278_s3 + $0x18] sm:$0xff] }
 0x363   :  { %v1288_v20 = vrot.slane %v1287_v14, 4 }
 0x365   :  { %v1289_v47 = vadd.f32 %v1288_v20, %v1287_v14  ;;  %v2149_v14 = vld [vmem:[%s4279_s4 + $0x18] sm:$0xff] }
 0x367   :  { %v1290_v21 = vrot.slane %v1289_v47, 2 }
 0x369   :  { %v1291_v22 = vadd.f32 %v1290_v21, %v1289_v47  ;;  %v2150_v47 = vld [vmem:[%s4278_s3 + $0x20] sm:$0xff] }
 0x36b   :  { %v1292_v48 = vrot.slane %v1291_v22, 1 }
 0x36d   :  { %v1293_v11 = vadd.f32 %v1292_v48, %v1291_v22  ;;  %v2151_v22 = vld [vmem:[%s4279_s4 + $0x20] sm:$0xff] }
 0x36f   :  { %2100 = vmatmul.mubr.msk.f32.vlgmr.msra.gmra.mrb[36].mxu1 %vm177_vm1, %v1293_v11  ;;  %v2152_v11 = vld [vmem:[%s4278_s3 + $0x28] sm:$0xff] }
 0x370   :  { %2129 = vmatpush1.bf16.msra.mxu1 %v2631_v8  ;;  %1705 = vmatprep.mubr.f32.mxu1 %v4336_v6 }
 0x371   :  { %1963 = vmatprep.subr.msk.mxu1 %vm221_vm2, %v2140_v34 }
 0x374   :  { %1964 = vmatpush1.msk.msra.mxu1 %vm221_vm2, %v2141_v44  ;;  %v2153_v44 = vld [vmem:[%s4279_s4 + $0x28] sm:$0xff] }
 0x442   :  { %v1363_v31 = vpop.f32.mrb[36].mxu1 }
 0x443   :  { %v1364_v19 = vadd.f32 1e-05, %v1363_v31  ;;  %v2101_v53 = vpop.f32.mrb[37].mxu1 }
 0x445   :  { %2138 = vrsqrt.f32 %v1364_v19  ;;  %v2154_v19 = vld [vmem:[%s4278_s3 + $0x30] sm:$0xff] }
 0x44f   :  { %v2139_v41 = vpop.eup %2138 }
 0x450   :  { %v3783_v8 = vrot.slane %v2139_v41, %v2426_v36  ;;  %v2144_v36 = vld [vmem:[%s4278_s3 + $0x8] sm:$0xff]  ;;  %v2155_v41 = vld [vmem:[%s4279_s4 + $0x30] sm:$0xff] }
 0x452   :  { %v1372_v15 = vmul.f32 %v3783_v8, %v3642_v54  ;;  %v1373_v29 = vmul.f32 %v3783_v8, %v3647_v62  ;;  %v1374_v54 = vmul.f32 %v3783_v8, %v3652_v63  ;;  %v2145_v62 = vld [vmem:[%s4279_s4 + $0x8] sm:$0xff]  ;;  %v1375_v63 = vmul.f32 %v3783_v8, %v3659_v28 }
 0x453   :  { %v1376_v28 = vmul.f32 %v3783_v8, %v3666_v32  ;;  %v1377_v32 = vmul.f32 %v3783_v8, %v3674_v35  ;;  %v1378_v35 = vmul.f32 %v3783_v8, %v3682_v26  ;;  %v1379_v26 = vmul.f32 %v3783_v8, %v3690_v52 }
 0x454   :  { %v1389_v38 = vmul.f32 %v2142_v9, %v1372_v15  ;;  %v1390_v18 = vmul.f32 %v2144_v36, %v1373_v29  ;;  %v1391_v61 = vmul.f32 %v2146_v39, %v1374_v54  ;;  %v1392_v12 = vmul.f32 %v2148_v49, %v1375_v63  ;;  %v2156_v29 = vld [vmem:[%s4278_s3 + $0x38] sm:$0xff]  ;;  %v2161_v39 = vld [vmem:[%s4279_s4 + $0x48] sm:$0xff]  ;;  %v2162_v63 = vld [vmem:[%s4278_s3 + $0x50] sm:$0xff] }
 0x455   :  { %v1393_v21 = vmul.f32 %v2150_v47, %v1376_v28  ;;  %v1394_v34 = vmul.f32 %v2152_v11, %v1377_v32  ;;  %v1395_v53 = vmul.f32 %v2154_v19, %v1378_v35  ;;  %v1396_v9 = vmul.f32 %v2156_v29, %v1379_v26  ;;  %v2166_v47 = vld [vmem:[%s4278_s3 + $0x60] sm:$0xff]  ;;  %v2171_v19 = vld [vmem:[%s4279_s4 + $0x70] sm:$0xff]  ;;  %v2172_v26 = vld [vmem:[%s4278_s3 + $0x78] sm:$0xff] }
 0x456   :  { %v1406_v16 = vadd.f32 %v2143_v58, %v1389_v38  ;;  %v1407_v56 = vadd.f32 %v2145_v62, %v1390_v18  ;;  %v1408_v42 = vadd.f32 %v2147_v5, %v1391_v61  ;;  %v1409_v20 = vadd.f32 %v2149_v14, %v1392_v12  ;;  %v2157_v38 = vld [vmem:[%s4279_s4 + $0x38] sm:$0xff]  ;;  %v2159_v18 = vld [vmem:[%s4279_s4 + $0x40] sm:$0xff]  ;;  %v2160_v62 = vld [vmem:[%s4278_s3 + $0x48] sm:$0xff] }
 0x457   :  { %v1410_v48 = vadd.f32 %v2151_v22, %v1393_v21  ;;  %v1411_v31 = vadd.f32 %v2153_v44, %v1394_v34  ;;  %v1412_v15 = vadd.f32 %v2155_v41, %v1395_v53  ;;  %v1380_v52 = vmul.f32 %v3783_v8, %v3698_v57  ;;  %v2164_v12 = vld [vmem:[%s4278_s3 + $0x58] sm:$0xff]  ;;  %v2167_v32 = vld [vmem:[%s4279_s4 + $0x60] sm:$0xff]  ;;  %v2169_v34 = vld [vmem:[%s4279_s4 + $0x68] sm:$0xff] }
 0x458   :  { %1946 = vmatmul.mubr.msk.f32.vlgmr.msra.gmra.mrb[38].mxu0 %vm177_vm1, %v1406_v16  ;;  %1965 = vmatmul.mubr.msk.f32.vlgmr.msra.gmra.mrb[38].mxu1 %vm177_vm1, %v1406_v16  ;;  %v1413_v58 = vadd.f32 %v2157_v38, %v1396_v9  ;;  %v2158_v16 = vld [vmem:[%s4278_s3 + $0x40] sm:$0xff]  ;;  %v1381_v57 = vmul.f32 %v3783_v8, %v3706_v23  ;;  %v1382_v23 = vmul.f32 %v3783_v8, %v3714_v2  ;;  %v2165_v14 = vld [vmem:[%s4279_s4 + $0x58] sm:$0xff]  ;;  %v2170_v44 = vld [vmem:[%s4278_s3 + $0x70] sm:$0xff] }
 0x459   :  { %1544 = vmatprep.mubr.f32.mxu0 %v4336_v6  ;;  %1711 = vmatprep.mubr.f32.mxu1 %v4336_v6  ;;  %v1397_v36 = vmul.f32 %v2158_v16, %v1380_v52  ;;  %v1383_v2 = vmul.f32 %v3783_v8, %v3722_v50  ;;  %v1384_v50 = vmul.f32 %v3783_v8, %v3730_v43  ;;  %v2174_v9 = vld [vmem:[%s4278_s3 + $0x80] sm:$0x1f] }
 0x45a   :  { %v1399_v5 = vmul.f32 %v2162_v63, %v1382_v23  ;;  %v1385_v43 = vmul.f32 %v3783_v8, %v3738_v0  ;;  %v1386_v0 = vmul.f32 %v3783_v8, %v3746_v4  ;;  %v1387_v4 = vmul.f32 %v3783_v8, %v3752_v7 }
 0x45b   :  { %v1414_v54 = vadd.f32 %v2159_v18, %v1397_v36  ;;  %v1400_v28 = vmul.f32 %v2164_v12, %v1383_v2  ;;  %v1401_v21 = vmul.f32 %v2166_v47, %v1384_v50  ;;  %v1388_v7 = vmul.f32 %v3783_v8, %v3758_v24  ;;  %v4391_v12 = vld [vmem:[#allocation4_spill] sm:$0xff]  ;;  %v4392_v50 = vld [vmem:[#allocation5_spill] sm:$0xff] }
 0x45c   :  { %1947 = vmatmul.mubr.msk.f32.gmra.mrb[40].mxu0 %vm177_vm1, %v1407_v56  ;;  %1966 = vmatmul.mubr.msk.f32.gmra.mrb[40].mxu1 %vm177_vm1, %v1407_v56  ;;  %v1398_v56 = vmul.f32 %v2160_v62, %v1381_v57  ;;  %v1404_v41 = vmul.f32 %v2172_v26, %v1387_v4  ;;  %v4398_v26 = vld [vmem:[#allocation11_spill] sm:$0xff] }
 0x45d   :  { %1550 = vmatprep.mubr.f32.mxu0 %v4336_v6  ;;  %1717 = vmatprep.mubr.f32.mxu1 %v4336_v6  ;;  %v1418_v22 = vadd.f32 %v2167_v32, %v1401_v21  ;;  %v1405_v52 = vmul.f32 %v2174_v9, %v1388_v7  ;;  %v4393_v21 = vld [vmem:[#allocation6_spill] sm:$0xff]  ;;  %v4394_v32 = vld [vmem:[#allocation7_spill] sm:$0xff] }
 0x45e   :  { %v1415_v61 = vadd.f32 %v2161_v39, %v1398_v56 }
 0x45f   :  { %v1422_v24 = vadd.f32 %v1405_v52, %v2983_v40  ;;  %v4400_v52 = vld [vmem:[#allocation13_spill] sm:$0xff] }
 0x460   :  { %1948 = vmatmul.mubr.msk.f32.gmra.mrb[42].mxu0 %vm177_vm1, %v1408_v42  ;;  %1967 = vmatmul.mubr.msk.f32.gmra.mrb[42].mxu1 %vm177_vm1, %v1408_v42  ;;  %v2163_v42 = vld [vmem:[%s4279_s4 + $0x50] sm:$0xff] }
 0x461   :  { %1556 = vmatprep.mubr.f32.mxu0 %v4336_v6  ;;  %1723 = vmatprep.mubr.f32.mxu1 %v4336_v6  ;;  %v1416_v49 = vadd.f32 %v2163_v42, %v1399_v5  ;;  %v4390_v5 = vld [vmem:[#allocation3_spill] sm:$0xff] }
 0x464   :  { %1949 = vmatmul.mubr.msk.f32.gmra.mrb[44].mxu0 %vm177_vm1, %v1409_v20  ;;  %1968 = vmatmul.mubr.msk.f32.gmra.mrb[44].mxu1 %vm177_vm1, %v1409_v20  ;;  %v1417_v20 = vadd.f32 %v2165_v14, %v1400_v28 }
 0x465   :  { %1562 = vmatprep.mubr.f32.mxu0 %v4336_v6  ;;  %1729 = vmatprep.mubr.f32.mxu1 %v4336_v6 }
 0x468   :  { %1950 = vmatmul.mubr.msk.f32.gmra.mrb[46].mxu0 %vm177_vm1, %v1410_v48  ;;  %1969 = vmatmul.mubr.msk.f32.gmra.mrb[46].mxu1 %vm177_vm1, %v1410_v48  ;;  %v2168_v48 = vld [vmem:[%s4278_s3 + $0x68] sm:$0xff] }
 0x469   :  { %1568 = vmatprep.mubr.f32.mxu0 %v4336_v6  ;;  %1735 = vmatprep.mubr.f32.mxu1 %v4336_v6  ;;  %v1402_v11 = vmul.f32 %v2168_v48, %v1385_v43 }
 0x46b   :  { %v1419_v35 = vadd.f32 %v2169_v34, %v1402_v11 }
 0x46c   :  { %1951 = vmatmul.mubr.msk.f32.gmra.mrb[48].mxu0 %vm177_vm1, %v1411_v31  ;;  %1970 = vmatmul.mubr.msk.f32.gmra.mrb[48].mxu1 %vm177_vm1, %v1411_v31  ;;  %v1403_v31 = vmul.f32 %v2170_v44, %v1386_v0  ;;  %v4395_v0 = vld [vmem:[#allocation8_spill] sm:$0xff] }
 0x46d   :  { %1574 = vmatprep.mubr.f32.mxu0 %v4336_v6  ;;  %1741 = vmatprep.mubr.f32.mxu1 %v4336_v6 }
 0x46e   :  { %v1420_v53 = vadd.f32 %v2171_v19, %v1403_v31  ;;  %v4397_v19 = vld [vmem:[#allocation10_spill] sm:$0xff] }
 0x470   :  { %1952 = vmatmul.mubr.msk.f32.gmra.mrb[50].mxu0 %vm177_vm1, %v1412_v15  ;;  %1971 = vmatmul.mubr.msk.f32.gmra.mrb[50].mxu1 %vm177_vm1, %v1412_v15  ;;  %v2173_v15 = vld [vmem:[%s4279_s4 + $0x78] sm:$0xff] }
 0x471   :  { %1580 = vmatprep.mubr.f32.mxu0 %v4336_v6  ;;  %1747 = vmatprep.mubr.f32.mxu1 %v4336_v6  ;;  %v1421_v29 = vadd.f32 %v2173_v15, %v1404_v41 }
 0x474   :  { %1953 = vmatmul.mubr.msk.f32.gmra.mrb[52].mxu0 %vm177_vm1, %v1413_v58  ;;  %1972 = vmatmul.mubr.msk.f32.gmra.mrb[52].mxu1 %vm177_vm1, %v1413_v58 }
 0x475   :  { %1586 = vmatprep.mubr.f32.mxu0 %v4336_v6  ;;  %1753 = vmatprep.mubr.f32.mxu1 %v4336_v6 }
 0x478   :  { %1954 = vmatmul.mubr.msk.f32.gmra.mrb[54].mxu0 %vm177_vm1, %v1414_v54  ;;  %1973 = vmatmul.mubr.msk.f32.gmra.mrb[54].mxu1 %vm177_vm1, %v1414_v54 }
 0x479   :  { %1592 = vmatprep.mubr.f32.mxu0 %v4336_v6  ;;  %1759 = vmatprep.mubr.f32.mxu1 %v4336_v6 }
 0x47c   :  { %1955 = vmatmul.mubr.msk.f32.gmra.mrb[56].mxu0 %vm177_vm1, %v1415_v61  ;;  %1974 = vmatmul.mubr.msk.f32.gmra.mrb[56].mxu1 %vm177_vm1, %v1415_v61 }
 0x47d   :  { %1598 = vmatprep.mubr.f32.mxu0 %v4336_v6  ;;  %1765 = vmatprep.mubr.f32.mxu1 %v4336_v6 }
 0x480   :  { %1956 = vmatmul.mubr.msk.f32.gmra.mrb[58].mxu0 %vm177_vm1, %v1416_v49  ;;  %1975 = vmatmul.mubr.msk.f32.gmra.mrb[58].mxu1 %vm177_vm1, %v1416_v49 }
 0x481   :  { %1604 = vmatprep.mubr.f32.mxu0 %v4336_v6  ;;  %1771 = vmatprep.mubr.f32.mxu1 %v4336_v6 }
 0x484   :  { %1957 = vmatmul.mubr.msk.f32.gmra.mrb[60].mxu0 %vm177_vm1, %v1417_v20  ;;  %1976 = vmatmul.mubr.msk.f32.gmra.mrb[60].mxu1 %vm177_vm1, %v1417_v20 }
 0x485   :  { %1610 = vmatprep.mubr.f32.mxu0 %v4336_v6  ;;  %1777 = vmatprep.mubr.f32.mxu1 %v4336_v6 }
 0x488   :  { %1958 = vmatmul.mubr.msk.f32.gmra.mrb[62].mxu0 %vm177_vm1, %v1418_v22  ;;  %1977 = vmatmul.mubr.msk.f32.gmra.mrb[62].mxu1 %vm177_vm1, %v1418_v22 }
 0x489   :  { %1616 = vmatprep.mubr.f32.mxu0 %v4336_v6  ;;  %1783 = vmatprep.mubr.f32.mxu1 %v4336_v6 }
 0x48c   :  { %1959 = vmatmul.mubr.msk.f32.gmra.mrb[64].mxu0 %vm177_vm1, %v1419_v35  ;;  %1978 = vmatmul.mubr.msk.f32.gmra.mrb[64].mxu1 %vm177_vm1, %v1419_v35  ;;  %v4396_v35 = vld [vmem:[#allocation9_spill] sm:$0xff] }
 0x48d   :  { %1622 = vmatprep.mubr.f32.mxu0 %v4336_v6  ;;  %1789 = vmatprep.mubr.f32.mxu1 %v4336_v6 }
 0x490   :  { %1960 = vmatmul.mubr.msk.f32.gmra.mrb[66].mxu0 %vm177_vm1, %v1420_v53  ;;  %1979 = vmatmul.mubr.msk.f32.gmra.mrb[66].mxu1 %vm177_vm1, %v1420_v53 }
 0x491   :  { %1628 = vmatprep.mubr.f32.mxu0 %v4336_v6  ;;  %1795 = vmatprep.mubr.f32.mxu1 %v4336_v6 }
 0x494   :  { %1961 = vmatmul.mubr.msk.f32.gmra.mrb[68].mxu0 %vm177_vm1, %v1421_v29  ;;  %1980 = vmatmul.mubr.msk.f32.gmra.mrb[68].mxu1 %vm177_vm1, %v1421_v29  ;;  %v4399_v29 = vld [vmem:[#allocation12_spill] sm:$0xff] }
 0x495   :  { %1634 = vmatprep.mubr.f32.mxu0 %v4336_v6  ;;  %1801 = vmatprep.mubr.f32.mxu1 %v4336_v6 }
 0x498   :  { %1962 = vmatmul.mubr.msk.f32.gmra.mrb[70].mxu0 %vm177_vm1, %v1422_v24  ;;  %1981 = vmatmul.mubr.msk.f32.gmra.mrb[70].mxu1 %vm177_vm1, %v1422_v24 }
 0x52b   :  { %v1540_v8 = vpop.f32.mrb[38].mxu0  ;;  %v1707_v38 = vpop.f32.mrb[38].mxu1 }
 0x52c   :  { %v1541_v58 = vadd.f32 %v1540_v8, %v3006_v33  ;;  %v1708_v16 = vadd.f32 %v1707_v38, %v3011_v3  ;;  %v1542_v36 = vpop.f32.mrb[39].mxu0  ;;  %v1709_v57 = vpop.f32.mrb[39].mxu1 }
 0x52d   :  { %v1543_v18 = vadd.f32 %v1542_v36, %v3016_v45  ;;  %v1710_v54 = vadd.f32 %v1709_v57, %v3021_v55  ;;  %v4402_v36 = vld [vmem:[#allocation15_spill] sm:$0xff] }
 0x52e   :  { %1982 = vst [vmem:[%s4281_s7 + $0x220] sm:$0xff] %v1541_v58  ;;  %1984 = vst [vmem:[%s4281_s7 + $0x230] sm:$0xff] %v1708_v16  ;;  %v4401_v58 = vld [vmem:[#allocation14_spill] sm:$0xff] }
 0x52f   :  { %1983 = vst [vmem:[%s4281_s7 + $0x228] sm:$0xff] %v1543_v18  ;;  %1985 = vst.msk [vmem:[%s4281_s7 + $0x238] sm:$0xff] %vm1003_vm4, %v1710_v54  ;;  %v1546_v6 = vpop.f32.mrb[40].mxu0  ;;  %v1713_v40 = vpop.f32.mrb[40].mxu1 }
 0x530   :  { %v1547_v33 = vadd.f32 %v1546_v6, %v3030_v13  ;;  %v1714_v3 = vadd.f32 %v1713_v40, %v3035_v17  ;;  %v1548_v45 = vpop.f32.mrb[41].mxu0  ;;  %v1715_v55 = vpop.f32.mrb[41].mxu1  ;;  %v4403_v6 = vld [vmem:[#allocation16_spill] sm:$0xff] }
 0x531   :  { %v1549_v62 = vadd.f32 %v1548_v45, %v3046_v59  ;;  %v1716_v56 = vadd.f32 %v1715_v55, %v3051_v37 }
 0x532   :  { %1986 = vst [vmem:[%s4281_s7 + $0x240] sm:$0xff] %v1547_v33  ;;  %1988 = vst [vmem:[%s4281_s7 + $0x250] sm:$0xff] %v1714_v3  ;;  %v4404_v33 = vld [vmem:[#allocation17_spill] sm:$0xff] }
 0x533   :  { %1987 = vst [vmem:[%s4281_s7 + $0x248] sm:$0xff] %v1549_v62  ;;  %1989 = vst.msk [vmem:[%s4281_s7 + $0x258] sm:$0xff] %vm1003_vm4, %v1716_v56  ;;  %v1552_v13 = vpop.f32.mrb[42].mxu0  ;;  %v1719_v17 = vpop.f32.mrb[42].mxu1  ;;  %v4405_v62 = vld [vmem:[#allocation18_spill] sm:$0xff] }
 0x534   :  { %v1553_v59 = vadd.f32 %v1552_v13, %v3067_v1  ;;  %v1720_v37 = vadd.f32 %v1719_v17, %v3072_v51  ;;  %v1554_v23 = vpop.f32.mrb[43].mxu0  ;;  %v1721_v39 = vpop.f32.mrb[43].mxu1  ;;  %v4406_v13 = vld [vmem:[#allocation19_spill] sm:$0xff] }
 0x535   :  { %v1555_v61 = vadd.f32 %v1554_v23, %v3083_v60  ;;  %v1722_v63 = vadd.f32 %v1721_v39, %v3088_v25  ;;  %v4389_v60 = vld [vmem:[#allocation2_spill] sm:$0xff]  ;;  %v4407_v23 = vld [vmem:[#allocation20_spill] sm:$0xff] }
 0x536   :  { %1990 = vst [vmem:[%s4281_s7 + $0x260] sm:$0xff] %v1553_v59  ;;  %1992 = vst [vmem:[%s4281_s7 + $0x270] sm:$0xff] %v1720_v37 }
 0x537   :  { %1991 = vst [vmem:[%s4281_s7 + $0x268] sm:$0xff] %v1555_v61  ;;  %1993 = vst.msk [vmem:[%s4281_s7 + $0x278] sm:$0xff] %vm1003_vm4, %v1722_v63  ;;  %v1558_v1 = vpop.f32.mrb[44].mxu0  ;;  %v1725_v51 = vpop.f32.mrb[44].mxu1  ;;  %v4408_v61 = vld [vmem:[#allocation21_spill] sm:$0xff] }
 0x538   :  { %v1559_v25 = vadd.f32 %v1558_v1, %v4389_v60  ;;  %v1726_v2 = vadd.f32 %v1725_v51, %v4390_v5  ;;  %v1560_v42 = vpop.f32.mrb[45].mxu0  ;;  %v1727_v49 = vpop.f32.mrb[45].mxu1  ;;  %v4409_v60 = vld [vmem:[#allocation22_spill] sm:$0xff]  ;;  %v4410_v5 = vld [vmem:[#allocation23_spill] sm:$0xff] }
 0x539   :  { %v1561_v28 = vadd.f32 %v1560_v42, %v4391_v12  ;;  %v1728_v14 = vadd.f32 %v1727_v49, %v4392_v50  ;;  %v4411_v12 = vld [vmem:[#allocation24_spill] sm:$0xff]  ;;  %v4412_v50 = vld [vmem:[#allocation25_spill] sm:$0xff] }
 0x53a   :  { %1994 = vst [vmem:[%s4281_s7 + $0x280] sm:$0xff] %v1559_v25  ;;  %1996 = vst [vmem:[%s4281_s7 + $0x290] sm:$0xff] %v1726_v2 }
 0x53b   :  { %1995 = vst [vmem:[%s4281_s7 + $0x288] sm:$0xff] %v1561_v28  ;;  %1997 = vst.msk [vmem:[%s4281_s7 + $0x298] sm:$0xff] %vm1003_vm4, %v1728_v14  ;;  %v1564_v20 = vpop.f32.mrb[46].mxu0  ;;  %v1731_v47 = vpop.f32.mrb[46].mxu1 }
 0x53c   :  { %v1565_v43 = vadd.f32 %v1564_v20, %v4393_v21  ;;  %v1732_v22 = vadd.f32 %v1731_v47, %v4394_v32  ;;  %v1566_v48 = vpop.f32.mrb[47].mxu0  ;;  %v1733_v11 = vpop.f32.mrb[47].mxu1  ;;  %v4413_v21 = vld [vmem:[#allocation26_spill] sm:$0xff]  ;;  %v4414_v32 = vld [vmem:[#allocation27_spill] sm:$0xff] }
 0x53d   :  { %v1567_v34 = vadd.f32 %v1566_v48, %v4395_v0  ;;  %v1734_v44 = vadd.f32 %v1733_v11, %v4396_v35  ;;  %v4415_v0 = vld [vmem:[#allocation28_spill] sm:$0xff]  ;;  %v4416_v35 = vld [vmem:[#allocation29_spill] sm:$0xff] }
 0x53e   :  { %1998 = vst [vmem:[%s4281_s7 + $0x2a0] sm:$0xff] %v1565_v43  ;;  %2000 = vst [vmem:[%s4281_s7 + $0x2b0] sm:$0xff] %v1732_v22 }
 0x53f   :  { %1999 = vst [vmem:[%s4281_s7 + $0x2a8] sm:$0xff] %v1567_v34  ;;  %2001 = vst.msk [vmem:[%s4281_s7 + $0x2b8] sm:$0xff] %vm1003_vm4, %v1734_v44  ;;  %v1570_v31 = vpop.f32.mrb[48].mxu0  ;;  %v1737_v4 = vpop.f32.mrb[48].mxu1 }
 0x540   :  { %v1571_v53 = vadd.f32 %v1570_v31, %v4397_v19  ;;  %v1738_v41 = vadd.f32 %v1737_v4, %v4398_v26  ;;  %v1572_v7 = vpop.f32.mrb[49].mxu0  ;;  %v1739_v15 = vpop.f32.mrb[49].mxu1  ;;  %v4417_v19 = vld [vmem:[#allocation30_spill] sm:$0xff]  ;;  %v4418_v26 = vld [vmem:[#allocation31_spill] sm:$0xff] }
 0x541   :  { %v1573_v9 = vadd.f32 %v1572_v7, %v4399_v29  ;;  %v1740_v24 = vadd.f32 %v1739_v15, %v4400_v52  ;;  %v4419_v29 = vld [vmem:[#allocation32_spill] sm:$0xff]  ;;  %v4420_v52 = vld [vmem:[#allocation33_spill] sm:$0xff] }
 0x542   :  { %2002 = vst [vmem:[%s4281_s7 + $0x2c0] sm:$0xff] %v1571_v53  ;;  %2004 = vst [vmem:[%s4281_s7 + $0x2d0] sm:$0xff] %v1738_v41 }
 0x543   :  { %2003 = vst [vmem:[%s4281_s7 + $0x2c8] sm:$0xff] %v1573_v9  ;;  %2005 = vst.msk [vmem:[%s4281_s7 + $0x2d8] sm:$0xff] %vm1003_vm4, %v1740_v24  ;;  %v1576_v8 = vpop.f32.mrb[50].mxu0  ;;  %v1743_v38 = vpop.f32.mrb[50].mxu1 }
 0x544   :  { %v1577_v16 = vadd.f32 %v1576_v8, %v4401_v58  ;;  %v1744_v57 = vadd.f32 %v1743_v38, %v4402_v36  ;;  %v1578_v18 = vpop.f32.mrb[51].mxu0  ;;  %v1745_v54 = vpop.f32.mrb[51].mxu1  ;;  %v4421_v58 = vld [vmem:[#allocation34_spill] sm:$0xff]  ;;  %v4422_v36 = vld [vmem:[#allocation35_spill] sm:$0xff] }
 0x545   :  { %v1579_v40 = vadd.f32 %v1578_v18, %v4403_v6  ;;  %v1746_v3 = vadd.f32 %v1745_v54, %v4404_v33  ;;  %v4423_v6 = vld [vmem:[#allocation36_spill] sm:$0xff]  ;;  %v4424_v33 = vld [vmem:[#allocation37_spill] sm:$0xff] }
 0x546   :  { %2006 = vst [vmem:[%s4281_s7 + $0x2e0] sm:$0xff] %v1577_v16  ;;  %2008 = vst [vmem:[%s4281_s7 + $0x2f0] sm:$0xff] %v1744_v57 }
 0x547   :  { %2007 = vst [vmem:[%s4281_s7 + $0x2e8] sm:$0xff] %v1579_v40  ;;  %2009 = vst.msk [vmem:[%s4281_s7 + $0x2f8] sm:$0xff] %vm1003_vm4, %v1746_v3  ;;  %v1582_v45 = vpop.f32.mrb[52].mxu0  ;;  %v1749_v55 = vpop.f32.mrb[52].mxu1 }
 0x548   :  { %v1583_v56 = vadd.f32 %v1582_v45, %v4405_v62  ;;  %v1750_v17 = vadd.f32 %v1749_v55, %v4406_v13  ;;  %v1584_v59 = vpop.f32.mrb[53].mxu0  ;;  %v1751_v37 = vpop.f32.mrb[53].mxu1  ;;  %v4425_v62 = vld [vmem:[#allocation38_spill] sm:$0xff]  ;;  %v4426_v13 = vld [vmem:[#allocation39_spill] sm:$0xff] }
 0x549   :  { %v1585_v39 = vadd.f32 %v1584_v59, %v4407_v23  ;;  %v1752_v63 = vadd.f32 %v1751_v37, %v4408_v61  ;;  %v4427_v23 = vld [vmem:[#allocation40_spill] sm:$0xff]  ;;  %v4428_v61 = vld [vmem:[#allocation41_spill] sm:$0xff] }
 0x54a   :  { %2010 = vst [vmem:[%s4281_s7 + $0x300] sm:$0xff] %v1583_v56  ;;  %2012 = vst [vmem:[%s4281_s7 + $0x310] sm:$0xff] %v1750_v17 }
 0x54b   :  { %2011 = vst [vmem:[%s4281_s7 + $0x308] sm:$0xff] %v1585_v39  ;;  %2013 = vst.msk [vmem:[%s4281_s7 + $0x318] sm:$0xff] %vm1003_vm4, %v1752_v63  ;;  %v1588_v1 = vpop.f32.mrb[54].mxu0  ;;  %v1755_v51 = vpop.f32.mrb[54].mxu1 }
 0x54c   :  { %v1589_v25 = vadd.f32 %v1588_v1, %v4409_v60  ;;  %v1756_v2 = vadd.f32 %v1755_v51, %v4410_v5  ;;  %v1590_v42 = vpop.f32.mrb[55].mxu0  ;;  %v1757_v49 = vpop.f32.mrb[55].mxu1  ;;  %v4429_v60 = vld [vmem:[#allocation42_spill] sm:$0xff]  ;;  %v4430_v5 = vld [vmem:[#allocation43_spill] sm:$0xff] }
 0x54d   :  { %v1591_v28 = vadd.f32 %v1590_v42, %v4411_v12  ;;  %v1758_v14 = vadd.f32 %v1757_v49, %v4412_v50  ;;  %v4431_v12 = vld [vmem:[#allocation44_spill] sm:$0xff]  ;;  %v4432_v50 = vld [vmem:[#allocation45_spill] sm:$0xff] }
 0x54e   :  { %2014 = vst [vmem:[%s4281_s7 + $0x320] sm:$0xff] %v1589_v25  ;;  %2016 = vst [vmem:[%s4281_s7 + $0x330] sm:$0xff] %v1756_v2 }
 0x54f   :  { %2015 = vst [vmem:[%s4281_s7 + $0x328] sm:$0xff] %v1591_v28  ;;  %2017 = vst.msk [vmem:[%s4281_s7 + $0x338] sm:$0xff] %vm1003_vm4, %v1758_v14  ;;  %v1594_v20 = vpop.f32.mrb[56].mxu0  ;;  %v1761_v47 = vpop.f32.mrb[56].mxu1 }
 0x550   :  { %v1595_v43 = vadd.f32 %v1594_v20, %v4413_v21  ;;  %v1762_v22 = vadd.f32 %v1761_v47, %v4414_v32  ;;  %v1596_v48 = vpop.f32.mrb[57].mxu0  ;;  %v1763_v11 = vpop.f32.mrb[57].mxu1  ;;  %v4433_v21 = vld [vmem:[#allocation46_spill] sm:$0xff]  ;;  %v4434_v32 = vld [vmem:[#allocation47_spill] sm:$0xff] }
 0x551   :  { %v1597_v34 = vadd.f32 %v1596_v48, %v4415_v0  ;;  %v1764_v44 = vadd.f32 %v1763_v11, %v4416_v35  ;;  %v4435_v0 = vld [vmem:[#allocation48_spill] sm:$0xff]  ;;  %v4436_v35 = vld [vmem:[#allocation49_spill] sm:$0xff] }
 0x552   :  { %2018 = vst [vmem:[%s4281_s7 + $0x340] sm:$0xff] %v1595_v43  ;;  %2020 = vst [vmem:[%s4281_s7 + $0x350] sm:$0xff] %v1762_v22 }
 0x553   :  { %2019 = vst [vmem:[%s4281_s7 + $0x348] sm:$0xff] %v1597_v34  ;;  %2021 = vst.msk [vmem:[%s4281_s7 + $0x358] sm:$0xff] %vm1003_vm4, %v1764_v44  ;;  %v1600_v31 = vpop.f32.mrb[58].mxu0  ;;  %v1767_v4 = vpop.f32.mrb[58].mxu1 }
 0x554   :  { %v1601_v53 = vadd.f32 %v1600_v31, %v4417_v19  ;;  %v1768_v41 = vadd.f32 %v1767_v4, %v4418_v26  ;;  %v1602_v7 = vpop.f32.mrb[59].mxu0  ;;  %v1769_v15 = vpop.f32.mrb[59].mxu1  ;;  %v4437_v19 = vld [vmem:[#allocation50_spill] sm:$0xff]  ;;  %v4438_v26 = vld [vmem:[#allocation51_spill] sm:$0xff] }
 0x555   :  { %v1603_v9 = vadd.f32 %v1602_v7, %v4419_v29  ;;  %v1770_v24 = vadd.f32 %v1769_v15, %v4420_v52  ;;  %v4439_v29 = vld [vmem:[#allocation52_spill] sm:$0xff]  ;;  %v4440_v52 = vld [vmem:[#allocation53_spill] sm:$0xff] }
 0x556   :  { %2022 = vst [vmem:[%s4281_s7 + $0x360] sm:$0xff] %v1601_v53  ;;  %2024 = vst [vmem:[%s4281_s7 + $0x370] sm:$0xff] %v1768_v41 }
 0x557   :  { %2023 = vst [vmem:[%s4281_s7 + $0x368] sm:$0xff] %v1603_v9  ;;  %2025 = vst.msk [vmem:[%s4281_s7 + $0x378] sm:$0xff] %vm1003_vm4, %v1770_v24  ;;  %v1606_v8 = vpop.f32.mrb[60].mxu0  ;;  %v1773_v38 = vpop.f32.mrb[60].mxu1 }
 0x558   :  { %v1607_v16 = vadd.f32 %v1606_v8, %v4421_v58  ;;  %v1774_v57 = vadd.f32 %v1773_v38, %v4422_v36  ;;  %v1608_v18 = vpop.f32.mrb[61].mxu0  ;;  %v1775_v54 = vpop.f32.mrb[61].mxu1 }
 0x559   :  { %v1609_v40 = vadd.f32 %v1608_v18, %v4423_v6  ;;  %v1776_v3 = vadd.f32 %v1775_v54, %v4424_v33 }
 0x55a   :  { %2026 = vst [vmem:[%s4281_s7 + $0x380] sm:$0xff] %v1607_v16  ;;  %2028 = vst [vmem:[%s4281_s7 + $0x390] sm:$0xff] %v1774_v57 }
 0x55b   :  { %2027 = vst [vmem:[%s4281_s7 + $0x388] sm:$0xff] %v1609_v40  ;;  %2029 = vst.msk [vmem:[%s4281_s7 + $0x398] sm:$0xff] %vm1003_vm4, %v1776_v3  ;;  %v1612_v45 = vpop.f32.mrb[62].mxu0  ;;  %v1779_v55 = vpop.f32.mrb[62].mxu1 }
 0x55c   :  { %v1613_v56 = vadd.f32 %v1612_v45, %v4425_v62  ;;  %v1780_v17 = vadd.f32 %v1779_v55, %v4426_v13  ;;  %v1614_v59 = vpop.f32.mrb[63].mxu0  ;;  %v1781_v37 = vpop.f32.mrb[63].mxu1 }
 0x55d   :  { %v1615_v39 = vadd.f32 %v1614_v59, %v4427_v23  ;;  %v1782_v63 = vadd.f32 %v1781_v37, %v4428_v61 }
 0x55e   :  { %2030 = vst [vmem:[%s4281_s7 + $0x3a0] sm:$0xff] %v1613_v56  ;;  %2032 = vst [vmem:[%s4281_s7 + $0x3b0] sm:$0xff] %v1780_v17 }
 0x55f   :  { %2031 = vst [vmem:[%s4281_s7 + $0x3a8] sm:$0xff] %v1615_v39  ;;  %2033 = vst.msk [vmem:[%s4281_s7 + $0x3b8] sm:$0xff] %vm1003_vm4, %v1782_v63  ;;  %v1618_v1 = vpop.f32.mrb[64].mxu0  ;;  %v1785_v51 = vpop.f32.mrb[64].mxu1 }
 0x560   :  { %v1619_v25 = vadd.f32 %v1618_v1, %v4429_v60  ;;  %v1786_v2 = vadd.f32 %v1785_v51, %v4430_v5  ;;  %v1620_v42 = vpop.f32.mrb[65].mxu0  ;;  %v1787_v49 = vpop.f32.mrb[65].mxu1 }
 0x561   :  { %v1621_v28 = vadd.f32 %v1620_v42, %v4431_v12  ;;  %v1788_v14 = vadd.f32 %v1787_v49, %v4432_v50 }
 0x562   :  { %2034 = vst [vmem:[%s4281_s7 + $0x3c0] sm:$0xff] %v1619_v25  ;;  %2036 = vst [vmem:[%s4281_s7 + $0x3d0] sm:$0xff] %v1786_v2 }
 0x563   :  { %2035 = vst [vmem:[%s4281_s7 + $0x3c8] sm:$0xff] %v1621_v28  ;;  %2037 = vst.msk [vmem:[%s4281_s7 + $0x3d8] sm:$0xff] %vm1003_vm4, %v1788_v14  ;;  %v1624_v20 = vpop.f32.mrb[66].mxu0  ;;  %v1791_v47 = vpop.f32.mrb[66].mxu1 }
 0x564   :  { %v1625_v43 = vadd.f32 %v1624_v20, %v4433_v21  ;;  %v1792_v22 = vadd.f32 %v1791_v47, %v4434_v32  ;;  %v1626_v48 = vpop.f32.mrb[67].mxu0  ;;  %v1793_v11 = vpop.f32.mrb[67].mxu1 }
 0x565   :  { %v1627_v34 = vadd.f32 %v1626_v48, %v4435_v0  ;;  %v1794_v44 = vadd.f32 %v1793_v11, %v4436_v35 }
 0x566   :  { %2038 = vst [vmem:[%s4281_s7 + $0x3e0] sm:$0xff] %v1625_v43  ;;  %2040 = vst [vmem:[%s4281_s7 + $0x3f0] sm:$0xff] %v1792_v22 }
 0x567   :  { %2039 = vst [vmem:[%s4281_s7 + $0x3e8] sm:$0xff] %v1627_v34  ;;  %2041 = vst.msk [vmem:[%s4281_s7 + $0x3f8] sm:$0xff] %vm1003_vm4, %v1794_v44  ;;  %v1630_v31 = vpop.f32.mrb[68].mxu0  ;;  %v1797_v4 = vpop.f32.mrb[68].mxu1 }
 0x568   :  { %v1631_v53 = vadd.f32 %v1630_v31, %v4437_v19  ;;  %v1798_v41 = vadd.f32 %v1797_v4, %v4438_v26  ;;  %v1632_v7 = vpop.f32.mrb[69].mxu0  ;;  %v1799_v15 = vpop.f32.mrb[69].mxu1 }
 0x569   :  { %v1633_v9 = vadd.f32 %v1632_v7, %v4439_v29  ;;  %v1800_v24 = vadd.f32 %v1799_v15, %v4440_v52 }
 0x56a   :  { %2042 = vst [vmem:[%s4281_s7 + $0x400] sm:$0xff] %v1631_v53  ;;  %2044 = vst [vmem:[%s4281_s7 + $0x410] sm:$0xff] %v1798_v41 }
 0x56b   :  { %2043 = vst [vmem:[%s4281_s7 + $0x408] sm:$0xff] %v1633_v9  ;;  %2045 = vst.msk [vmem:[%s4281_s7 + $0x418] sm:$0xff] %vm1003_vm4, %v1800_v24  ;;  %v1636_v8 = vpop.f32.mrb[70].mxu0  ;;  %v1803_v38 = vpop.f32.mrb[70].mxu1 }
 0x56c   :  { %v1637_v58 = vadd.f32 %v1636_v8, %v3585_v10  ;;  %v1804_v16 = vadd.f32 %v1803_v38, %v3590_v27  ;;  %v1638_v36 = vpop.f32.mrb[71].mxu0  ;;  %v1805_v57 = vpop.f32.mrb[71].mxu1 }
 0x56d   :  { %v1639_v18 = vadd.f32 %v1638_v36, %v3601_v30  ;;  %v1806_v54 = vadd.f32 %v1805_v57, %v3606_v46 }
 0x56e   :  { %2046 = vst [vmem:[%s4281_s7 + $0x420] sm:$0x1f] %v1637_v58  ;;  %2048 = vst [vmem:[%s4281_s7 + $0x430] sm:$0x1f] %v1804_v16 }
 0x56f   :  { %2047 = vst [vmem:[%s4281_s7 + $0x428] sm:$0x1f] %v1639_v18  ;;  %2049 = vst.msk [vmem:[%s4281_s7 + $0x438] sm:$0x1f] %vm1068_vm5, %v1806_v54 }

</bundles_post_ra>
